<compile_context>
chip_gen: v7x
topology: tpu7x:2x2x1
jax: 0.10.0
libtpu: 0.0.40
codegen_flags: <defaults>
</compile_context>

<pallas_src>
import numpy as np
import jax
import jax.numpy as jnp
from jax.experimental import pallas as pl
from jax.experimental.pallas import tpu as pltpu


# ----------------------------------------------------------------------------
# Fused whole-network kernel
# ----------------------------------------------------------------------------
def _net_kernel(x_ref, w1_ref, b1_ref, w2_ref, b2_ref,
                wf1_ref, bf1_ref, wf2_ref, bf2_ref, out_ref):
    bt = x_ref.shape[1]                      # batch tile (sublane dim)
    bf16, f32 = jnp.bfloat16, jnp.float32

    # ---- conv1 (1->10, 5x5) + ReLU + 2x2 maxpool ---------------------------
    x = x_ref[...].astype(bf16)              # (28, Bt, 28): row, batch, col
    xr = x.reshape(14, 2, bt, 28)
    x_par = (xr[:, 0], xr[:, 1])             # even / odd input rows, (14,Bt,28)

    def conv1_rowphase(phase):
        acc = None
        for ki in range(5):                  # accumulate over kernel rows
            r0 = phase + ki
            rows = x_par[r0 % 2][r0 // 2: r0 // 2 + 12]        # (12, Bt, 28)
            d = jnp.dot(rows.reshape(12 * bt, 28), w1_ref[ki],
                        preferred_element_type=f32)            # (12*Bt, 256)
            acc = d if acc is None else acc + d
        return jnp.maximum(acc[:, :128], acc[:, 128:])         # col-phase max

    z1 = jnp.maximum(conv1_rowphase(0), conv1_rowphase(1))     # row-phase max
    h1 = jnp.maximum(z1 + b1_ref[...], 0.0)                    # (12*Bt, 128) f32
    h1 = h1.astype(bf16).reshape(6, 2, bt, 128)                # lanes: ch*12+col
    h1_par = (h1[:, 0], h1[:, 1])                              # even/odd rows

    # ---- conv2 (10->20, 5x5) + ReLU + 2x2 maxpool --------------------------
    def conv2_rowphase(phase):
        acc = None
        for ki in range(5):
            r0 = phase + ki
            rows = h1_par[r0 % 2][r0 // 2: r0 // 2 + 4]        # (4, Bt, 128)
            d = jnp.dot(rows.reshape(4 * bt, 128), w2_ref[ki],
                        preferred_element_type=f32)            # (4*Bt, 256)
            acc = d if acc is None else acc + d
        return jnp.maximum(acc[:, :128], acc[:, 128:])

    z2 = jnp.maximum(conv2_rowphase(0), conv2_rowphase(1))
    h2 = jnp.maximum(z2 + b2_ref[...], 0.0)                    # (4*Bt, 128) f32
    h2 = h2.astype(bf16).reshape(4, bt, 128)                   # lanes: ch*4+col

    # ---- Flatten + Linear(320,50) + ReLU + Linear(50,10) -------------------
    z3 = None
    for s in range(4):                       # flatten == per-row accumulation
        d = jnp.dot(h2[s], wf1_ref[s], preferred_element_type=f32)
        z3 = d if z3 is None else z3 + d                       # (Bt, 128)
    z3 = jnp.maximum(z3 + bf1_ref[...], 0.0).astype(bf16)
    out = jnp.dot(z3, wf2_ref[...], preferred_element_type=f32)
    out_ref[...] = (out + bf2_ref[...]).astype(out_ref.dtype)  # (Bt, 128)


# ----------------------------------------------------------------------------
# One-time (init) weight re-layout
# ----------------------------------------------------------------------------
def prepare_params(params):
    """Conv -> per-kernel-row Toeplitz slabs (both pool phases along N, lane
    dims padded to 128), fc weights permuted / padded; MXU operands in bf16."""
    f32n = np.float32
    w1 = np.asarray(params["w1"], f32n)       # (10, 1, 5, 5)
    w2 = np.asarray(params["w2"], f32n)       # (20, 10, 5, 5)
    b1 = np.asarray(params["b1"], f32n)
    b2 = np.asarray(params["b2"], f32n)
    fc1_w = np.asarray(params["fc1_w"], f32n)  # (50, 320)
    fc1_b = np.asarray(params["fc1_b"], f32n)
    fc2_w = np.asarray(params["fc2_w"], f32n)  # (10, 50)
    fc2_b = np.asarray(params["fc2_b"], f32n)

    # conv1: (5, 28, 256); cols [0:128) = pool col-phase 0, [128:256) = phase 1;
    # within a phase col = co*12 + v (v = pooled output column), pad 120->128.
    w1k = np.zeros((5, 28, 256), f32n)
    co1 = np.arange(10) * 12
    for ki in range(5):
        for kj in range(5):
            for v in range(12):
                for p in range(2):
                    j_in = 2 * v + p + kj                     # <= 27
                    w1k[ki, j_in, p * 128 + co1 + v] = w1[:, 0, ki, kj]
    b1p = np.zeros((1, 128), f32n)
    b1p[0, :120] = np.repeat(b1, 12)

    # conv2: (5, 128, 256); row = ci*12 + j_in (h1 lane layout, rows 120..127
    # hit the zero padding); cols as above with co*4 + v, pad 80->128.
    w2k = np.zeros((5, 128, 256), f32n)
    co2 = np.arange(20) * 4
    for ki in range(5):
        for kj in range(5):
            for v in range(4):
                for p in range(2):
                    j_in = 2 * v + p + kj                     # <= 11
                    for ci in range(10):
                        w2k[ki, ci * 12 + j_in, p * 128 + co2 + v] = w2[:, ci, ki, kj]
    b2p = np.zeros((1, 128), f32n)
    b2p[0, :80] = np.repeat(b2, 4)

    # fc1 as 4 per-spatial-row slabs (4, 128, 128); torch flatten index is
    # co*16 + u*4 + v, our h2[u] lane index is co*4 + v.
    wf1 = np.zeros((4, 128, 128), f32n)
    t = fc1_w.reshape(50, 20, 4, 4).transpose(2, 1, 3, 0)     # (u, co, v, n)
    wf1[:, :80, :50] = t.reshape(4, 80, 50)
    bf1p = np.zeros((1, 128), f32n)
    bf1p[0, :50] = fc1_b

    # fc2 padded to (128, 128); logits live in cols [0:10).
    wf2 = np.zeros((128, 128), f32n)
    wf2[:50, :10] = fc2_w.T
    bf2p = np.zeros((1, 128), f32n)
    bf2p[0, :10] = fc2_b

    bf16 = jnp.bfloat16
    return {
        "w1k": jnp.asarray(w1k, bf16), "b1": jnp.asarray(b1p),
        "w2k": jnp.asarray(w2k, bf16), "b2": jnp.asarray(b2p),
        "wf1": jnp.asarray(wf1, bf16), "bf1": jnp.asarray(bf1p),
        "wf2": jnp.asarray(wf2, bf16), "bf2": jnp.asarray(bf2p),
    }


# ----------------------------------------------------------------------------
# Forward pass: single pallas_call, 1-D grid over batch tiles
# ----------------------------------------------------------------------------
def net_forward(x, prep):
    n = x.shape[0]
    assert x.shape[1:] == (1, 28, 28)
    nb = -(-n // 256)                         # grid steps, batch tile <= 256
    per = -(-n // nb)
    block_b = -(-per // 8) * 8                # tile: multiple of 8 sublanes
    n_pad = nb * block_b

    # (N,1,28,28) -> (28, N_pad, 28): rows leading so in-kernel window
    # selection is leading-dim slicing (cheap HBM relayout, once per call).
    xt = jnp.transpose(x.reshape(n, 28, 28), (1, 0, 2))
    if n_pad != n:
        xt = jnp.pad(xt, ((0, 0), (0, n_pad - n), (0, 0)))

    out = pl.pallas_call(
        _net_kernel,
        out_shape=jax.ShapeDtypeStruct((n_pad, 128), jnp.float32),
        grid_spec=pltpu.PrefetchScalarGridSpec(
            num_scalar_prefetch=0,
            grid=(n_pad // block_b,),
            in_specs=[
                pl.BlockSpec((28, block_b, 28), lambda i: (0, i, 0)),
                pl.BlockSpec((5, 28, 256), lambda i: (0, 0, 0)),
                pl.BlockSpec((1, 128), lambda i: (0, 0)),
                pl.BlockSpec((5, 128, 256), lambda i: (0, 0, 0)),
                pl.BlockSpec((1, 128), lambda i: (0, 0)),
                pl.BlockSpec((4, 128, 128), lambda i: (0, 0, 0)),
                pl.BlockSpec((1, 128), lambda i: (0, 0)),
                pl.BlockSpec((128, 128), lambda i: (0, 0)),
                pl.BlockSpec((1, 128), lambda i: (0, 0)),
            ],
            out_specs=pl.BlockSpec((block_b, 128), lambda i: (i, 0)),
        ),
        compiler_params=pltpu.CompilerParams(
            dimension_semantics=("parallel",),
            vmem_limit_bytes=48 * 1024 * 1024,
        ),
    )(xt, prep["w1k"], prep["b1"], prep["w2k"], prep["b2"],
      prep["wf1"], prep["bf1"], prep["wf2"], prep["bf2"])
    return out[:n, :10]


# ----------------------------------------------------------------------------
# Params and pure-JAX reference (correctness self-check)
# ----------------------------------------------------------------------------
def init_params(key):
    ks = jax.random.split(key, 8)
    s = 0.1
    return {
        "w1": s * jax.random.normal(ks[0], (10, 1, 5, 5), jnp.float32),
        "b1": s * jax.random.normal(ks[1], (10,), jnp.float32),
        "w2": s * jax.random.normal(ks[2], (20, 10, 5, 5), jnp.float32),
        "b2": s * jax.random.normal(ks[3], (20,), jnp.float32),
        "fc1_w": s * jax.random.normal(ks[4], (50, 320), jnp.float32),
        "fc1_b": s * jax.random.normal(ks[5], (50,), jnp.float32),
        "fc2_w": s * jax.random.normal(ks[6], (10, 50), jnp.float32),
        "fc2_b": s * jax.random.normal(ks[7], (10,), jnp.float32),
    }


def _ref_forward(x, params):
    def conv(x, w, b):
        co, ci, k, _ = w.shape
        n, _, h, wd = x.shape
        ho, wo = h - k + 1, wd - k + 1
        cols = [x[:, :, i:i + ho, j:j + wo] for i in range(k) for j in range(k)]
        p = jnp.stack(cols, axis=2).reshape(n, ci * k * k, ho * wo)
        y = jnp.einsum("of,nfs->nos", w.reshape(co, ci * k * k), p,
                       precision="highest")
        return y.reshape(n, co, ho, wo) + b[None, :, None, None]

    def pool(x):
        n, c, h, w = x.shape
        return x.reshape(n, c, h // 2, 2, w // 2, 2).max(axis=(3, 5))

    y = pool(jax.nn.relu(conv(x, params["w1"], params["b1"])))
    y = pool(jax.nn.relu(conv(y, params["w2"], params["b2"])))
    y = y.reshape(x.shape[0], -1)
    y = jax.nn.relu(jnp.dot(y, params["fc1_w"].T, precision="highest")
                    + params["fc1_b"])
    return jnp.dot(y, params["fc2_w"].T, precision="highest") + params["fc2_b"]


if __name__ == "__main__":
    key = jax.random.PRNGKey(0)
    pkey, xkey = jax.random.split(key)
    params = init_params(pkey)
    prep = prepare_params(params)             # one-time weight re-layout

    # Linear(320, .) implies a 1x28x28 (MNIST-style) input; batch = 2.
    x = jax.random.normal(xkey, (2, 1, 28, 28), jnp.float32)

    fwd = jax.jit(net_forward)
    out = jax.block_until_ready(fwd(x, prep))

    assert out.shape == (2, 10), out.shape
    assert bool(jnp.all(jnp.isfinite(out)))

    ref = _ref_forward(x, params)
    err = float(jnp.max(jnp.abs(out - ref)))
    # bf16 MXU operands (f32 accumulation) -> slightly looser tolerance than f32.
    assert np.allclose(np.asarray(out), np.asarray(ref),
                       rtol=3e-2, atol=3e-2), err

    print("KERNEL_OK")
</pallas_src>

<mosaic_0001>
module attributes {stable_mosaic.version = 11 : i64} {
  func.func @_net_kernel(%arg0: i32, %arg1: memref<28x8x28xf32, #tpu.memory_space<vmem>>, %arg2: memref<5x28x256xbf16, #tpu.memory_space<vmem>>, %arg3: memref<1x128xf32, #tpu.memory_space<vmem>>, %arg4: memref<5x128x256xbf16, #tpu.memory_space<vmem>>, %arg5: memref<1x128xf32, #tpu.memory_space<vmem>>, %arg6: memref<4x128x128xbf16, #tpu.memory_space<vmem>>, %arg7: memref<1x128xf32, #tpu.memory_space<vmem>>, %arg8: memref<128x128xbf16, #tpu.memory_space<vmem>>, %arg9: memref<1x128xf32, #tpu.memory_space<vmem>>, %arg10: memref<8x128xf32, #tpu.memory_space<vmem>>) attributes {dimension_semantics = [#tpu.dimension_semantics<parallel>], iteration_bounds = array<i64: 1>, scalar_prefetch = 0 : i64, scratch_operands = 0 : i64, tpu.core_type = #tpu.core_type<tc>, window_params = [{transform_indices = @transform_0, window_bounds = array<i64: 28, 8, 28>}, {pipeline_mode = #tpu.pipeline_mode<synchronous>, transform_indices = @transform_1, window_bounds = array<i64: 5, 28, 256>}, {pipeline_mode = #tpu.pipeline_mode<synchronous>, transform_indices = @transform_2, window_bounds = array<i64: 1, 128>}, {pipeline_mode = #tpu.pipeline_mode<synchronous>, transform_indices = @transform_3, window_bounds = array<i64: 5, 128, 256>}, {pipeline_mode = #tpu.pipeline_mode<synchronous>, transform_indices = @transform_4, window_bounds = array<i64: 1, 128>}, {pipeline_mode = #tpu.pipeline_mode<synchronous>, transform_indices = @transform_5, window_bounds = array<i64: 4, 128, 128>}, {pipeline_mode = #tpu.pipeline_mode<synchronous>, transform_indices = @transform_6, window_bounds = array<i64: 1, 128>}, {pipeline_mode = #tpu.pipeline_mode<synchronous>, transform_indices = @transform_7, window_bounds = array<i64: 128, 128>}, {pipeline_mode = #tpu.pipeline_mode<synchronous>, transform_indices = @transform_8, window_bounds = array<i64: 1, 128>}, {transform_indices = @transform_9, window_bounds = array<i64: 8, 128>}]} {
    %c0 = arith.constant 0 : index
    %c0_0 = arith.constant 0 : index
    %c0_1 = arith.constant 0 : index
    %0 = vector.load %arg1[%c0, %c0_0, %c0_1] : memref<28x8x28xf32, #tpu.memory_space<vmem>>, vector<28x8x28xf32>
    %1 = arith.truncf %0 : vector<28x8x28xf32> to vector<28x8x28xbf16>
    %2 = vector.shape_cast %1 : vector<28x8x28xbf16> to vector<14x2x8x28xbf16>
    %3 = vector.extract_strided_slice %2 {offsets = [0, 0, 0, 0], sizes = [14, 1, 8, 28], strides = [1, 1, 1, 1]} : vector<14x2x8x28xbf16> to vector<14x1x8x28xbf16>
    %4 = vector.shape_cast %3 : vector<14x1x8x28xbf16> to vector<14x8x28xbf16>
    %5 = vector.extract_strided_slice %2 {offsets = [0, 1, 0, 0], sizes = [14, 1, 8, 28], strides = [1, 1, 1, 1]} : vector<14x2x8x28xbf16> to vector<14x1x8x28xbf16>
    %6 = vector.shape_cast %5 : vector<14x1x8x28xbf16> to vector<14x8x28xbf16>
    %7 = vector.extract_strided_slice %4 {offsets = [0, 0, 0], sizes = [12, 8, 28], strides = [1, 1, 1]} : vector<14x8x28xbf16> to vector<12x8x28xbf16>
    %8 = vector.shape_cast %7 : vector<12x8x28xbf16> to vector<96x28xbf16>
    %c0_2 = arith.constant 0 : index
    %c0_3 = arith.constant 0 : index
    %c0_4 = arith.constant 0 : index
    %9 = vector.load %arg2[%c0_2, %c0_3, %c0_4] : memref<5x28x256xbf16, #tpu.memory_space<vmem>>, vector<1x28x256xbf16>
    %10 = vector.shape_cast %9 : vector<1x28x256xbf16> to vector<28x256xbf16>
    %cst = arith.constant dense<0.000000e+00> : vector<96x256xf32>
    %11 = tpu.matmul %8, %10, %cst {dimension_numbers = #tpu.dot_dimension_numbers<[1], [0], [0], [1], [0, 0, 1, 1], [], []>} : vector<96x28xbf16>, vector<28x256xbf16>, vector<96x256xf32> -> vector<96x256xf32>
    %12 = vector.extract_strided_slice %6 {offsets = [0, 0, 0], sizes = [12, 8, 28], strides = [1, 1, 1]} : vector<14x8x28xbf16> to vector<12x8x28xbf16>
    %13 = vector.shape_cast %12 : vector<12x8x28xbf16> to vector<96x28xbf16>
    %c1 = arith.constant 1 : index
    %c0_5 = arith.constant 0 : index
    %c0_6 = arith.constant 0 : index
    %14 = vector.load %arg2[%c1, %c0_5, %c0_6] : memref<5x28x256xbf16, #tpu.memory_space<vmem>>, vector<1x28x256xbf16>
    %15 = vector.shape_cast %14 : vector<1x28x256xbf16> to vector<28x256xbf16>
    %cst_7 = arith.constant dense<0.000000e+00> : vector<96x256xf32>
    %16 = tpu.matmul %13, %15, %cst_7 {dimension_numbers = #tpu.dot_dimension_numbers<[1], [0], [0], [1], [0, 0, 1, 1], [], []>} : vector<96x28xbf16>, vector<28x256xbf16>, vector<96x256xf32> -> vector<96x256xf32>
    %17 = arith.addf %11, %16 : vector<96x256xf32>
    %18 = vector.extract_strided_slice %4 {offsets = [1, 0, 0], sizes = [12, 8, 28], strides = [1, 1, 1]} : vector<14x8x28xbf16> to vector<12x8x28xbf16>
    %19 = vector.shape_cast %18 : vector<12x8x28xbf16> to vector<96x28xbf16>
    %c2 = arith.constant 2 : index
    %c0_8 = arith.constant 0 : index
    %c0_9 = arith.constant 0 : index
    %20 = vector.load %arg2[%c2, %c0_8, %c0_9] : memref<5x28x256xbf16, #tpu.memory_space<vmem>>, vector<1x28x256xbf16>
    %21 = vector.shape_cast %20 : vector<1x28x256xbf16> to vector<28x256xbf16>
    %cst_10 = arith.constant dense<0.000000e+00> : vector<96x256xf32>
    %22 = tpu.matmul %19, %21, %cst_10 {dimension_numbers = #tpu.dot_dimension_numbers<[1], [0], [0], [1], [0, 0, 1, 1], [], []>} : vector<96x28xbf16>, vector<28x256xbf16>, vector<96x256xf32> -> vector<96x256xf32>
    %23 = arith.addf %17, %22 : vector<96x256xf32>
    %24 = vector.extract_strided_slice %6 {offsets = [1, 0, 0], sizes = [12, 8, 28], strides = [1, 1, 1]} : vector<14x8x28xbf16> to vector<12x8x28xbf16>
    %25 = vector.shape_cast %24 : vector<12x8x28xbf16> to vector<96x28xbf16>
    %c3 = arith.constant 3 : index
    %c0_11 = arith.constant 0 : index
    %c0_12 = arith.constant 0 : index
    %26 = vector.load %arg2[%c3, %c0_11, %c0_12] : memref<5x28x256xbf16, #tpu.memory_space<vmem>>, vector<1x28x256xbf16>
    %27 = vector.shape_cast %26 : vector<1x28x256xbf16> to vector<28x256xbf16>
    %cst_13 = arith.constant dense<0.000000e+00> : vector<96x256xf32>
    %28 = tpu.matmul %25, %27, %cst_13 {dimension_numbers = #tpu.dot_dimension_numbers<[1], [0], [0], [1], [0, 0, 1, 1], [], []>} : vector<96x28xbf16>, vector<28x256xbf16>, vector<96x256xf32> -> vector<96x256xf32>
    %29 = arith.addf %23, %28 : vector<96x256xf32>
    %30 = vector.extract_strided_slice %4 {offsets = [2, 0, 0], sizes = [12, 8, 28], strides = [1, 1, 1]} : vector<14x8x28xbf16> to vector<12x8x28xbf16>
    %31 = vector.shape_cast %30 : vector<12x8x28xbf16> to vector<96x28xbf16>
    %c4 = arith.constant 4 : index
    %c0_14 = arith.constant 0 : index
    %c0_15 = arith.constant 0 : index
    %32 = vector.load %arg2[%c4, %c0_14, %c0_15] : memref<5x28x256xbf16, #tpu.memory_space<vmem>>, vector<1x28x256xbf16>
    %33 = vector.shape_cast %32 : vector<1x28x256xbf16> to vector<28x256xbf16>
    %cst_16 = arith.constant dense<0.000000e+00> : vector<96x256xf32>
    %34 = tpu.matmul %31, %33, %cst_16 {dimension_numbers = #tpu.dot_dimension_numbers<[1], [0], [0], [1], [0, 0, 1, 1], [], []>} : vector<96x28xbf16>, vector<28x256xbf16>, vector<96x256xf32> -> vector<96x256xf32>
    %35 = arith.addf %29, %34 : vector<96x256xf32>
    %36 = vector.extract_strided_slice %35 {offsets = [0, 0], sizes = [96, 128], strides = [1, 1]} : vector<96x256xf32> to vector<96x128xf32>
    %37 = vector.extract_strided_slice %35 {offsets = [0, 128], sizes = [96, 128], strides = [1, 1]} : vector<96x256xf32> to vector<96x128xf32>
    %38 = arith.maximumf %36, %37 : vector<96x128xf32>
    %39 = vector.extract_strided_slice %6 {offsets = [0, 0, 0], sizes = [12, 8, 28], strides = [1, 1, 1]} : vector<14x8x28xbf16> to vector<12x8x28xbf16>
    %40 = vector.shape_cast %39 : vector<12x8x28xbf16> to vector<96x28xbf16>
    %c0_17 = arith.constant 0 : index
    %c0_18 = arith.constant 0 : index
    %c0_19 = arith.constant 0 : index
    %41 = vector.load %arg2[%c0_17, %c0_18, %c0_19] : memref<5x28x256xbf16, #tpu.memory_space<vmem>>, vector<1x28x256xbf16>
    %42 = vector.shape_cast %41 : vector<1x28x256xbf16> to vector<28x256xbf16>
    %cst_20 = arith.constant dense<0.000000e+00> : vector<96x256xf32>
    %43 = tpu.matmul %40, %42, %cst_20 {dimension_numbers = #tpu.dot_dimension_numbers<[1], [0], [0], [1], [0, 0, 1, 1], [], []>} : vector<96x28xbf16>, vector<28x256xbf16>, vector<96x256xf32> -> vector<96x256xf32>
    %44 = vector.extract_strided_slice %4 {offsets = [1, 0, 0], sizes = [12, 8, 28], strides = [1, 1, 1]} : vector<14x8x28xbf16> to vector<12x8x28xbf16>
    %45 = vector.shape_cast %44 : vector<12x8x28xbf16> to vector<96x28xbf16>
    %c1_21 = arith.constant 1 : index
    %c0_22 = arith.constant 0 : index
    %c0_23 = arith.constant 0 : index
    %46 = vector.load %arg2[%c1_21, %c0_22, %c0_23] : memref<5x28x256xbf16, #tpu.memory_space<vmem>>, vector<1x28x256xbf16>
    %47 = vector.shape_cast %46 : vector<1x28x256xbf16> to vector<28x256xbf16>
    %cst_24 = arith.constant dense<0.000000e+00> : vector<96x256xf32>
    %48 = tpu.matmul %45, %47, %cst_24 {dimension_numbers = #tpu.dot_dimension_numbers<[1], [0], [0], [1], [0, 0, 1, 1], [], []>} : vector<96x28xbf16>, vector<28x256xbf16>, vector<96x256xf32> -> vector<96x256xf32>
    %49 = arith.addf %43, %48 : vector<96x256xf32>
    %50 = vector.extract_strided_slice %6 {offsets = [1, 0, 0], sizes = [12, 8, 28], strides = [1, 1, 1]} : vector<14x8x28xbf16> to vector<12x8x28xbf16>
    %51 = vector.shape_cast %50 : vector<12x8x28xbf16> to vector<96x28xbf16>
    %c2_25 = arith.constant 2 : index
    %c0_26 = arith.constant 0 : index
    %c0_27 = arith.constant 0 : index
    %52 = vector.load %arg2[%c2_25, %c0_26, %c0_27] : memref<5x28x256xbf16, #tpu.memory_space<vmem>>, vector<1x28x256xbf16>
    %53 = vector.shape_cast %52 : vector<1x28x256xbf16> to vector<28x256xbf16>
    %cst_28 = arith.constant dense<0.000000e+00> : vector<96x256xf32>
    %54 = tpu.matmul %51, %53, %cst_28 {dimension_numbers = #tpu.dot_dimension_numbers<[1], [0], [0], [1], [0, 0, 1, 1], [], []>} : vector<96x28xbf16>, vector<28x256xbf16>, vector<96x256xf32> -> vector<96x256xf32>
    %55 = arith.addf %49, %54 : vector<96x256xf32>
    %56 = vector.extract_strided_slice %4 {offsets = [2, 0, 0], sizes = [12, 8, 28], strides = [1, 1, 1]} : vector<14x8x28xbf16> to vector<12x8x28xbf16>
    %57 = vector.shape_cast %56 : vector<12x8x28xbf16> to vector<96x28xbf16>
    %c3_29 = arith.constant 3 : index
    %c0_30 = arith.constant 0 : index
    %c0_31 = arith.constant 0 : index
    %58 = vector.load %arg2[%c3_29, %c0_30, %c0_31] : memref<5x28x256xbf16, #tpu.memory_space<vmem>>, vector<1x28x256xbf16>
    %59 = vector.shape_cast %58 : vector<1x28x256xbf16> to vector<28x256xbf16>
    %cst_32 = arith.constant dense<0.000000e+00> : vector<96x256xf32>
    %60 = tpu.matmul %57, %59, %cst_32 {dimension_numbers = #tpu.dot_dimension_numbers<[1], [0], [0], [1], [0, 0, 1, 1], [], []>} : vector<96x28xbf16>, vector<28x256xbf16>, vector<96x256xf32> -> vector<96x256xf32>
    %61 = arith.addf %55, %60 : vector<96x256xf32>
    %62 = vector.extract_strided_slice %6 {offsets = [2, 0, 0], sizes = [12, 8, 28], strides = [1, 1, 1]} : vector<14x8x28xbf16> to vector<12x8x28xbf16>
    %63 = vector.shape_cast %62 : vector<12x8x28xbf16> to vector<96x28xbf16>
    %c4_33 = arith.constant 4 : index
    %c0_34 = arith.constant 0 : index
    %c0_35 = arith.constant 0 : index
    %64 = vector.load %arg2[%c4_33, %c0_34, %c0_35] : memref<5x28x256xbf16, #tpu.memory_space<vmem>>, vector<1x28x256xbf16>
    %65 = vector.shape_cast %64 : vector<1x28x256xbf16> to vector<28x256xbf16>
    %cst_36 = arith.constant dense<0.000000e+00> : vector<96x256xf32>
    %66 = tpu.matmul %63, %65, %cst_36 {dimension_numbers = #tpu.dot_dimension_numbers<[1], [0], [0], [1], [0, 0, 1, 1], [], []>} : vector<96x28xbf16>, vector<28x256xbf16>, vector<96x256xf32> -> vector<96x256xf32>
    %67 = arith.addf %61, %66 : vector<96x256xf32>
    %68 = vector.extract_strided_slice %67 {offsets = [0, 0], sizes = [96, 128], strides = [1, 1]} : vector<96x256xf32> to vector<96x128xf32>
    %69 = vector.extract_strided_slice %67 {offsets = [0, 128], sizes = [96, 128], strides = [1, 1]} : vector<96x256xf32> to vector<96x128xf32>
    %70 = arith.maximumf %68, %69 : vector<96x128xf32>
    %71 = arith.maximumf %38, %70 : vector<96x128xf32>
    %c0_37 = arith.constant 0 : index
    %c0_38 = arith.constant 0 : index
    %72 = vector.load %arg3[%c0_37, %c0_38] : memref<1x128xf32, #tpu.memory_space<vmem>>, vector<1x128xf32>
    %73 = vector.broadcast %72 : vector<1x128xf32> to vector<96x128xf32>
    %74 = arith.addf %71, %73 : vector<96x128xf32>
    %cst_39 = arith.constant 0.000000e+00 : f32
    %75 = vector.broadcast %cst_39 : f32 to vector<96x128xf32>
    %76 = arith.maximumf %74, %75 : vector<96x128xf32>
    %77 = arith.truncf %76 : vector<96x128xf32> to vector<96x128xbf16>
    %78 = vector.shape_cast %77 : vector<96x128xbf16> to vector<6x2x8x128xbf16>
    %79 = vector.extract_strided_slice %78 {offsets = [0, 0, 0, 0], sizes = [6, 1, 8, 128], strides = [1, 1, 1, 1]} : vector<6x2x8x128xbf16> to vector<6x1x8x128xbf16>
    %80 = vector.shape_cast %79 : vector<6x1x8x128xbf16> to vector<6x8x128xbf16>
    %81 = vector.extract_strided_slice %78 {offsets = [0, 1, 0, 0], sizes = [6, 1, 8, 128], strides = [1, 1, 1, 1]} : vector<6x2x8x128xbf16> to vector<6x1x8x128xbf16>
    %82 = vector.shape_cast %81 : vector<6x1x8x128xbf16> to vector<6x8x128xbf16>
    %83 = vector.extract_strided_slice %80 {offsets = [0, 0, 0], sizes = [4, 8, 128], strides = [1, 1, 1]} : vector<6x8x128xbf16> to vector<4x8x128xbf16>
    %84 = vector.shape_cast %83 : vector<4x8x128xbf16> to vector<32x128xbf16>
    %c0_40 = arith.constant 0 : index
    %c0_41 = arith.constant 0 : index
    %c0_42 = arith.constant 0 : index
    %85 = vector.load %arg4[%c0_40, %c0_41, %c0_42] : memref<5x128x256xbf16, #tpu.memory_space<vmem>>, vector<1x128x256xbf16>
    %86 = vector.shape_cast %85 : vector<1x128x256xbf16> to vector<128x256xbf16>
    %cst_43 = arith.constant dense<0.000000e+00> : vector<32x256xf32>
    %87 = tpu.matmul %84, %86, %cst_43 {dimension_numbers = #tpu.dot_dimension_numbers<[1], [0], [0], [1], [0, 0, 1, 1], [], []>} : vector<32x128xbf16>, vector<128x256xbf16>, vector<32x256xf32> -> vector<32x256xf32>
    %88 = vector.extract_strided_slice %82 {offsets = [0, 0, 0], sizes = [4, 8, 128], strides = [1, 1, 1]} : vector<6x8x128xbf16> to vector<4x8x128xbf16>
    %89 = vector.shape_cast %88 : vector<4x8x128xbf16> to vector<32x128xbf16>
    %c1_44 = arith.constant 1 : index
    %c0_45 = arith.constant 0 : index
    %c0_46 = arith.constant 0 : index
    %90 = vector.load %arg4[%c1_44, %c0_45, %c0_46] : memref<5x128x256xbf16, #tpu.memory_space<vmem>>, vector<1x128x256xbf16>
    %91 = vector.shape_cast %90 : vector<1x128x256xbf16> to vector<128x256xbf16>
    %cst_47 = arith.constant dense<0.000000e+00> : vector<32x256xf32>
    %92 = tpu.matmul %89, %91, %cst_47 {dimension_numbers = #tpu.dot_dimension_numbers<[1], [0], [0], [1], [0, 0, 1, 1], [], []>} : vector<32x128xbf16>, vector<128x256xbf16>, vector<32x256xf32> -> vector<32x256xf32>
    %93 = arith.addf %87, %92 : vector<32x256xf32>
    %94 = vector.extract_strided_slice %80 {offsets = [1, 0, 0], sizes = [4, 8, 128], strides = [1, 1, 1]} : vector<6x8x128xbf16> to vector<4x8x128xbf16>
    %95 = vector.shape_cast %94 : vector<4x8x128xbf16> to vector<32x128xbf16>
    %c2_48 = arith.constant 2 : index
    %c0_49 = arith.constant 0 : index
    %c0_50 = arith.constant 0 : index
    %96 = vector.load %arg4[%c2_48, %c0_49, %c0_50] : memref<5x128x256xbf16, #tpu.memory_space<vmem>>, vector<1x128x256xbf16>
    %97 = vector.shape_cast %96 : vector<1x128x256xbf16> to vector<128x256xbf16>
    %cst_51 = arith.constant dense<0.000000e+00> : vector<32x256xf32>
    %98 = tpu.matmul %95, %97, %cst_51 {dimension_numbers = #tpu.dot_dimension_numbers<[1], [0], [0], [1], [0, 0, 1, 1], [], []>} : vector<32x128xbf16>, vector<128x256xbf16>, vector<32x256xf32> -> vector<32x256xf32>
    %99 = arith.addf %93, %98 : vector<32x256xf32>
    %100 = vector.extract_strided_slice %82 {offsets = [1, 0, 0], sizes = [4, 8, 128], strides = [1, 1, 1]} : vector<6x8x128xbf16> to vector<4x8x128xbf16>
    %101 = vector.shape_cast %100 : vector<4x8x128xbf16> to vector<32x128xbf16>
    %c3_52 = arith.constant 3 : index
    %c0_53 = arith.constant 0 : index
    %c0_54 = arith.constant 0 : index
    %102 = vector.load %arg4[%c3_52, %c0_53, %c0_54] : memref<5x128x256xbf16, #tpu.memory_space<vmem>>, vector<1x128x256xbf16>
    %103 = vector.shape_cast %102 : vector<1x128x256xbf16> to vector<128x256xbf16>
    %cst_55 = arith.constant dense<0.000000e+00> : vector<32x256xf32>
    %104 = tpu.matmul %101, %103, %cst_55 {dimension_numbers = #tpu.dot_dimension_numbers<[1], [0], [0], [1], [0, 0, 1, 1], [], []>} : vector<32x128xbf16>, vector<128x256xbf16>, vector<32x256xf32> -> vector<32x256xf32>
    %105 = arith.addf %99, %104 : vector<32x256xf32>
    %106 = vector.extract_strided_slice %80 {offsets = [2, 0, 0], sizes = [4, 8, 128], strides = [1, 1, 1]} : vector<6x8x128xbf16> to vector<4x8x128xbf16>
    %107 = vector.shape_cast %106 : vector<4x8x128xbf16> to vector<32x128xbf16>
    %c4_56 = arith.constant 4 : index
    %c0_57 = arith.constant 0 : index
    %c0_58 = arith.constant 0 : index
    %108 = vector.load %arg4[%c4_56, %c0_57, %c0_58] : memref<5x128x256xbf16, #tpu.memory_space<vmem>>, vector<1x128x256xbf16>
    %109 = vector.shape_cast %108 : vector<1x128x256xbf16> to vector<128x256xbf16>
    %cst_59 = arith.constant dense<0.000000e+00> : vector<32x256xf32>
    %110 = tpu.matmul %107, %109, %cst_59 {dimension_numbers = #tpu.dot_dimension_numbers<[1], [0], [0], [1], [0, 0, 1, 1], [], []>} : vector<32x128xbf16>, vector<128x256xbf16>, vector<32x256xf32> -> vector<32x256xf32>
    %111 = arith.addf %105, %110 : vector<32x256xf32>
    %112 = vector.extract_strided_slice %111 {offsets = [0, 0], sizes = [32, 128], strides = [1, 1]} : vector<32x256xf32> to vector<32x128xf32>
    %113 = vector.extract_strided_slice %111 {offsets = [0, 128], sizes = [32, 128], strides = [1, 1]} : vector<32x256xf32> to vector<32x128xf32>
    %114 = arith.maximumf %112, %113 : vector<32x128xf32>
    %115 = vector.extract_strided_slice %82 {offsets = [0, 0, 0], sizes = [4, 8, 128], strides = [1, 1, 1]} : vector<6x8x128xbf16> to vector<4x8x128xbf16>
    %116 = vector.shape_cast %115 : vector<4x8x128xbf16> to vector<32x128xbf16>
    %c0_60 = arith.constant 0 : index
    %c0_61 = arith.constant 0 : index
    %c0_62 = arith.constant 0 : index
    %117 = vector.load %arg4[%c0_60, %c0_61, %c0_62] : memref<5x128x256xbf16, #tpu.memory_space<vmem>>, vector<1x128x256xbf16>
    %118 = vector.shape_cast %117 : vector<1x128x256xbf16> to vector<128x256xbf16>
    %cst_63 = arith.constant dense<0.000000e+00> : vector<32x256xf32>
    %119 = tpu.matmul %116, %118, %cst_63 {dimension_numbers = #tpu.dot_dimension_numbers<[1], [0], [0], [1], [0, 0, 1, 1], [], []>} : vector<32x128xbf16>, vector<128x256xbf16>, vector<32x256xf32> -> vector<32x256xf32>
    %120 = vector.extract_strided_slice %80 {offsets = [1, 0, 0], sizes = [4, 8, 128], strides = [1, 1, 1]} : vector<6x8x128xbf16> to vector<4x8x128xbf16>
    %121 = vector.shape_cast %120 : vector<4x8x128xbf16> to vector<32x128xbf16>
    %c1_64 = arith.constant 1 : index
    %c0_65 = arith.constant 0 : index
    %c0_66 = arith.constant 0 : index
    %122 = vector.load %arg4[%c1_64, %c0_65, %c0_66] : memref<5x128x256xbf16, #tpu.memory_space<vmem>>, vector<1x128x256xbf16>
    %123 = vector.shape_cast %122 : vector<1x128x256xbf16> to vector<128x256xbf16>
    %cst_67 = arith.constant dense<0.000000e+00> : vector<32x256xf32>
    %124 = tpu.matmul %121, %123, %cst_67 {dimension_numbers = #tpu.dot_dimension_numbers<[1], [0], [0], [1], [0, 0, 1, 1], [], []>} : vector<32x128xbf16>, vector<128x256xbf16>, vector<32x256xf32> -> vector<32x256xf32>
    %125 = arith.addf %119, %124 : vector<32x256xf32>
    %126 = vector.extract_strided_slice %82 {offsets = [1, 0, 0], sizes = [4, 8, 128], strides = [1, 1, 1]} : vector<6x8x128xbf16> to vector<4x8x128xbf16>
    %127 = vector.shape_cast %126 : vector<4x8x128xbf16> to vector<32x128xbf16>
    %c2_68 = arith.constant 2 : index
    %c0_69 = arith.constant 0 : index
    %c0_70 = arith.constant 0 : index
    %128 = vector.load %arg4[%c2_68, %c0_69, %c0_70] : memref<5x128x256xbf16, #tpu.memory_space<vmem>>, vector<1x128x256xbf16>
    %129 = vector.shape_cast %128 : vector<1x128x256xbf16> to vector<128x256xbf16>
    %cst_71 = arith.constant dense<0.000000e+00> : vector<32x256xf32>
    %130 = tpu.matmul %127, %129, %cst_71 {dimension_numbers = #tpu.dot_dimension_numbers<[1], [0], [0], [1], [0, 0, 1, 1], [], []>} : vector<32x128xbf16>, vector<128x256xbf16>, vector<32x256xf32> -> vector<32x256xf32>
    %131 = arith.addf %125, %130 : vector<32x256xf32>
    %132 = vector.extract_strided_slice %80 {offsets = [2, 0, 0], sizes = [4, 8, 128], strides = [1, 1, 1]} : vector<6x8x128xbf16> to vector<4x8x128xbf16>
    %133 = vector.shape_cast %132 : vector<4x8x128xbf16> to vector<32x128xbf16>
    %c3_72 = arith.constant 3 : index
    %c0_73 = arith.constant 0 : index
    %c0_74 = arith.constant 0 : index
    %134 = vector.load %arg4[%c3_72, %c0_73, %c0_74] : memref<5x128x256xbf16, #tpu.memory_space<vmem>>, vector<1x128x256xbf16>
    %135 = vector.shape_cast %134 : vector<1x128x256xbf16> to vector<128x256xbf16>
    %cst_75 = arith.constant dense<0.000000e+00> : vector<32x256xf32>
    %136 = tpu.matmul %133, %135, %cst_75 {dimension_numbers = #tpu.dot_dimension_numbers<[1], [0], [0], [1], [0, 0, 1, 1], [], []>} : vector<32x128xbf16>, vector<128x256xbf16>, vector<32x256xf32> -> vector<32x256xf32>
    %137 = arith.addf %131, %136 : vector<32x256xf32>
    %138 = vector.extract_strided_slice %82 {offsets = [2, 0, 0], sizes = [4, 8, 128], strides = [1, 1, 1]} : vector<6x8x128xbf16> to vector<4x8x128xbf16>
    %139 = vector.shape_cast %138 : vector<4x8x128xbf16> to vector<32x128xbf16>
    %c4_76 = arith.constant 4 : index
    %c0_77 = arith.constant 0 : index
    %c0_78 = arith.constant 0 : index
    %140 = vector.load %arg4[%c4_76, %c0_77, %c0_78] : memref<5x128x256xbf16, #tpu.memory_space<vmem>>, vector<1x128x256xbf16>
    %141 = vector.shape_cast %140 : vector<1x128x256xbf16> to vector<128x256xbf16>
    %cst_79 = arith.constant dense<0.000000e+00> : vector<32x256xf32>
    %142 = tpu.matmul %139, %141, %cst_79 {dimension_numbers = #tpu.dot_dimension_numbers<[1], [0], [0], [1], [0, 0, 1, 1], [], []>} : vector<32x128xbf16>, vector<128x256xbf16>, vector<32x256xf32> -> vector<32x256xf32>
    %143 = arith.addf %137, %142 : vector<32x256xf32>
    %144 = vector.extract_strided_slice %143 {offsets = [0, 0], sizes = [32, 128], strides = [1, 1]} : vector<32x256xf32> to vector<32x128xf32>
    %145 = vector.extract_strided_slice %143 {offsets = [0, 128], sizes = [32, 128], strides = [1, 1]} : vector<32x256xf32> to vector<32x128xf32>
    %146 = arith.maximumf %144, %145 : vector<32x128xf32>
    %147 = arith.maximumf %114, %146 : vector<32x128xf32>
    %c0_80 = arith.constant 0 : index
    %c0_81 = arith.constant 0 : index
    %148 = vector.load %arg5[%c0_80, %c0_81] : memref<1x128xf32, #tpu.memory_space<vmem>>, vector<1x128xf32>
    %149 = vector.broadcast %148 : vector<1x128xf32> to vector<32x128xf32>
    %150 = arith.addf %147, %149 : vector<32x128xf32>
    %cst_82 = arith.constant 0.000000e+00 : f32
    %151 = vector.broadcast %cst_82 : f32 to vector<32x128xf32>
    %152 = arith.maximumf %150, %151 : vector<32x128xf32>
    %153 = arith.truncf %152 : vector<32x128xf32> to vector<32x128xbf16>
    %154 = vector.shape_cast %153 : vector<32x128xbf16> to vector<4x8x128xbf16>
    %155 = vector.extract_strided_slice %154 {offsets = [0, 0, 0], sizes = [1, 8, 128], strides = [1, 1, 1]} : vector<4x8x128xbf16> to vector<1x8x128xbf16>
    %156 = vector.shape_cast %155 : vector<1x8x128xbf16> to vector<8x128xbf16>
    %c0_83 = arith.constant 0 : index
    %c0_84 = arith.constant 0 : index
    %c0_85 = arith.constant 0 : index
    %157 = vector.load %arg6[%c0_83, %c0_84, %c0_85] : memref<4x128x128xbf16, #tpu.memory_space<vmem>>, vector<1x128x128xbf16>
    %158 = vector.shape_cast %157 : vector<1x128x128xbf16> to vector<128x128xbf16>
    %cst_86 = arith.constant dense<0.000000e+00> : vector<8x128xf32>
    %159 = tpu.matmul %156, %158, %cst_86 {dimension_numbers = #tpu.dot_dimension_numbers<[1], [0], [0], [1], [0, 0, 1, 1], [], []>} : vector<8x128xbf16>, vector<128x128xbf16>, vector<8x128xf32> -> vector<8x128xf32>
    %160 = vector.extract_strided_slice %154 {offsets = [1, 0, 0], sizes = [1, 8, 128], strides = [1, 1, 1]} : vector<4x8x128xbf16> to vector<1x8x128xbf16>
    %161 = vector.shape_cast %160 : vector<1x8x128xbf16> to vector<8x128xbf16>
    %c1_87 = arith.constant 1 : index
    %c0_88 = arith.constant 0 : index
    %c0_89 = arith.constant 0 : index
    %162 = vector.load %arg6[%c1_87, %c0_88, %c0_89] : memref<4x128x128xbf16, #tpu.memory_space<vmem>>, vector<1x128x128xbf16>
    %163 = vector.shape_cast %162 : vector<1x128x128xbf16> to vector<128x128xbf16>
    %cst_90 = arith.constant dense<0.000000e+00> : vector<8x128xf32>
    %164 = tpu.matmul %161, %163, %cst_90 {dimension_numbers = #tpu.dot_dimension_numbers<[1], [0], [0], [1], [0, 0, 1, 1], [], []>} : vector<8x128xbf16>, vector<128x128xbf16>, vector<8x128xf32> -> vector<8x128xf32>
    %165 = arith.addf %159, %164 : vector<8x128xf32>
    %166 = vector.extract_strided_slice %154 {offsets = [2, 0, 0], sizes = [1, 8, 128], strides = [1, 1, 1]} : vector<4x8x128xbf16> to vector<1x8x128xbf16>
    %167 = vector.shape_cast %166 : vector<1x8x128xbf16> to vector<8x128xbf16>
    %c2_91 = arith.constant 2 : index
    %c0_92 = arith.constant 0 : index
    %c0_93 = arith.constant 0 : index
    %168 = vector.load %arg6[%c2_91, %c0_92, %c0_93] : memref<4x128x128xbf16, #tpu.memory_space<vmem>>, vector<1x128x128xbf16>
    %169 = vector.shape_cast %168 : vector<1x128x128xbf16> to vector<128x128xbf16>
    %cst_94 = arith.constant dense<0.000000e+00> : vector<8x128xf32>
    %170 = tpu.matmul %167, %169, %cst_94 {dimension_numbers = #tpu.dot_dimension_numbers<[1], [0], [0], [1], [0, 0, 1, 1], [], []>} : vector<8x128xbf16>, vector<128x128xbf16>, vector<8x128xf32> -> vector<8x128xf32>
    %171 = arith.addf %165, %170 : vector<8x128xf32>
    %172 = vector.extract_strided_slice %154 {offsets = [3, 0, 0], sizes = [1, 8, 128], strides = [1, 1, 1]} : vector<4x8x128xbf16> to vector<1x8x128xbf16>
    %173 = vector.shape_cast %172 : vector<1x8x128xbf16> to vector<8x128xbf16>
    %c3_95 = arith.constant 3 : index
    %c0_96 = arith.constant 0 : index
    %c0_97 = arith.constant 0 : index
    %174 = vector.load %arg6[%c3_95, %c0_96, %c0_97] : memref<4x128x128xbf16, #tpu.memory_space<vmem>>, vector<1x128x128xbf16>
    %175 = vector.shape_cast %174 : vector<1x128x128xbf16> to vector<128x128xbf16>
    %cst_98 = arith.constant dense<0.000000e+00> : vector<8x128xf32>
    %176 = tpu.matmul %173, %175, %cst_98 {dimension_numbers = #tpu.dot_dimension_numbers<[1], [0], [0], [1], [0, 0, 1, 1], [], []>} : vector<8x128xbf16>, vector<128x128xbf16>, vector<8x128xf32> -> vector<8x128xf32>
    %177 = arith.addf %171, %176 : vector<8x128xf32>
    %c0_99 = arith.constant 0 : index
    %c0_100 = arith.constant 0 : index
    %178 = vector.load %arg7[%c0_99, %c0_100] : memref<1x128xf32, #tpu.memory_space<vmem>>, vector<1x128xf32>
    %179 = vector.broadcast %178 : vector<1x128xf32> to vector<8x128xf32>
    %180 = arith.addf %177, %179 : vector<8x128xf32>
    %cst_101 = arith.constant 0.000000e+00 : f32
    %181 = vector.broadcast %cst_101 : f32 to vector<8x128xf32>
    %182 = arith.maximumf %180, %181 : vector<8x128xf32>
    %183 = arith.truncf %182 : vector<8x128xf32> to vector<8x128xbf16>
    %c0_102 = arith.constant 0 : index
    %c0_103 = arith.constant 0 : index
    %184 = vector.load %arg8[%c0_102, %c0_103] : memref<128x128xbf16, #tpu.memory_space<vmem>>, vector<128x128xbf16>
    %cst_104 = arith.constant dense<0.000000e+00> : vector<8x128xf32>
    %185 = tpu.matmul %183, %184, %cst_104 {dimension_numbers = #tpu.dot_dimension_numbers<[1], [0], [0], [1], [0, 0, 1, 1], [], []>} : vector<8x128xbf16>, vector<128x128xbf16>, vector<8x128xf32> -> vector<8x128xf32>
    %c0_105 = arith.constant 0 : index
    %c0_106 = arith.constant 0 : index
    %186 = vector.load %arg9[%c0_105, %c0_106] : memref<1x128xf32, #tpu.memory_space<vmem>>, vector<1x128xf32>
    %187 = vector.broadcast %186 : vector<1x128xf32> to vector<8x128xf32>
    %188 = arith.addf %185, %187 : vector<8x128xf32>
    %c0_107 = arith.constant 0 : index
    %c0_108 = arith.constant 0 : index
    %189 = vector.load %arg10[%c0_107, %c0_108] : memref<8x128xf32, #tpu.memory_space<vmem>>, vector<8x128xf32>
    tpu.vector_store %arg10[%c0_107, %c0_108], %188 {strides = array<i32>} : memref<8x128xf32, #tpu.memory_space<vmem>>, vector<8x128xf32>,
    return
  }
  func.func @transform_0(%arg0: i32) -> (i32, i32, i32) {
    %c0_i32 = arith.constant 0 : i32
    %c0_i32_0 = arith.constant 0 : i32
    %c0_i32_1 = arith.constant 0 : i32
    return %c0_i32, %arg0, %c0_i32_0 : i32, i32, i32
  }
  func.func @transform_1(%arg0: i32) -> (i32, i32, i32) {
    %c0_i32 = arith.constant 0 : i32
    %c0_i32_0 = arith.constant 0 : i32
    %c0_i32_1 = arith.constant 0 : i32
    %c0_i32_2 = arith.constant 0 : i32
    return %c0_i32, %c0_i32_0, %c0_i32_1 : i32, i32, i32
  }
  func.func @transform_2(%arg0: i32) -> (i32, i32) {
    %c0_i32 = arith.constant 0 : i32
    %c0_i32_0 = arith.constant 0 : i32
    %c0_i32_1 = arith.constant 0 : i32
    return %c0_i32, %c0_i32_0 : i32, i32
  }
  func.func @transform_3(%arg0: i32) -> (i32, i32, i32) {
    %c0_i32 = arith.constant 0 : i32
    %c0_i32_0 = arith.constant 0 : i32
    %c0_i32_1 = arith.constant 0 : i32
    %c0_i32_2 = arith.constant 0 : i32
    return %c0_i32, %c0_i32_0, %c0_i32_1 : i32, i32, i32
  }
  func.func @transform_4(%arg0: i32) -> (i32, i32) {
    %c0_i32 = arith.constant 0 : i32
    %c0_i32_0 = arith.constant 0 : i32
    %c0_i32_1 = arith.constant 0 : i32
    return %c0_i32, %c0_i32_0 : i32, i32
  }
  func.func @transform_5(%arg0: i32) -> (i32, i32, i32) {
    %c0_i32 = arith.constant 0 : i32
    %c0_i32_0 = arith.constant 0 : i32
    %c0_i32_1 = arith.constant 0 : i32
    %c0_i32_2 = arith.constant 0 : i32
    return %c0_i32, %c0_i32_0, %c0_i32_1 : i32, i32, i32
  }
  func.func @transform_6(%arg0: i32) -> (i32, i32) {
    %c0_i32 = arith.constant 0 : i32
    %c0_i32_0 = arith.constant 0 : i32
    %c0_i32_1 = arith.constant 0 : i32
    return %c0_i32, %c0_i32_0 : i32, i32
  }
  func.func @transform_7(%arg0: i32) -> (i32, i32) {
    %c0_i32 = arith.constant 0 : i32
    %c0_i32_0 = arith.constant 0 : i32
    %c0_i32_1 = arith.constant 0 : i32
    return %c0_i32, %c0_i32_0 : i32, i32
  }
  func.func @transform_8(%arg0: i32) -> (i32, i32) {
    %c0_i32 = arith.constant 0 : i32
    %c0_i32_0 = arith.constant 0 : i32
    %c0_i32_1 = arith.constant 0 : i32
    return %c0_i32, %c0_i32_0 : i32, i32
  }
  func.func @transform_9(%arg0: i32) -> (i32, i32) {
    %c0_i32 = arith.constant 0 : i32
    %c0_i32_0 = arith.constant 0 : i32
    return %arg0, %c0_i32 : i32, i32
  }
}

</mosaic_0001>

<bundles_post_ra>
// kernel: net_forward.1
= control target key start
LH: loop header
LB: loop body
LE: loop exit
PB: predicated region body
PF: predicated region fallthrough
CT: control target
= control target key end

     0   :  { %14 = vsyncpa [#allocation3], 0  ;;  %s5110_s0 = inlined_call_operand.vmem [shape: f32[28,8,28], index: 0, kind: input, shape index: {}]   ;;  %s5111_s1 = inlined_call_operand.vmem [shape: bf16[5,28,256], index: 1, kind: input, shape index: {}]   ;;  %s5112_s2 = inlined_call_operand.vmem [shape: f32[1,128], index: 2, kind: input, shape index: {}]   ;;  %s5113_s3 = inlined_call_operand.hbm [shape: bf16[5,128,256], index: 3, kind: input, shape index: {}]   ;;  %s5114_s4 = inlined_call_operand.vmem [shape: f32[1,128], index: 4, kind: input, shape index: {}]   ;;  %s5115_s5 = inlined_call_operand.vmem [shape: bf16[4,128,128], index: 5, kind: input, shape index: {}]   ;;  %s5116_s6 = inlined_call_operand.vmem [shape: f32[1,128], index: 6, kind: input, shape index: {}]   ;;  %s5117_s7 = inlined_call_operand.hbm [shape: bf16[128,128], index: 7, kind: input, shape index: {}]   ;;  %s5118_s8 = inlined_call_operand.hbm [shape: f32[1,128], index: 8, kind: input, shape index: {}]   ;;  %s5119_s9 = inlined_call_operand.vmem [shape: f32[8,128], index: 9, kind: output, shape index: {}]  }
   0x1   :  { %15 = vsyncpa [#allocation5], 0  ;;  %s4306_s30 = smov [#allocation4]   ;;  %s4236_s13 = scalar_lea.hbm %s5117_s7, 1024 }
   0x2   :  { %s45_s10 = sshll.u32 %s4306_s30, 4  ;;  %p4237_p0 = scmp.ne.s32.totalorder %s5117_s7, %s4236_s13  ;;  %s46_s10 = int_to_ptr.vmem [resolvable:$true] %s45_s10 }
   0x3   :  { %p4240_p1 = scmp.lt.u32.totalorder %s4236_s13, %s5117_s7 }
   0x5   :  { %p4242_p2 = pnand %p4240_p1, %p4237_p0 }
   0x7   :  { %4245 = shalt.err (!%p4242_p2)
}
   0x8   :  { %s4246_s18 = scalar_lea.vmem %s46_s10, 1024  ;;  %p4251_p4 = scmp.lt.s32.totalorder %s46_s10, %s46_s10 }
   0x9   :  { %p4247_p3 = scmp.ne.s32.totalorder %s46_s10, %s4246_s18  ;;  %p4252_p5 = scmp.lt.s32.totalorder %s4246_s18, %s4246_s18 }
   0xb   :  { %p4253_p6 = por %p4252_p5, %p4251_p4 }
   0xd   :  { %p4254_p7 = pnand %p4253_p6, %p4247_p3 }
   0xf   :  { %4257 = shalt.err (!%p4254_p7)
}
  0x10   :  { %s4307_s19 = smov 64   ;;  %s4308_s20 = smov 4  }
  0x11   :  { %51 = dma.hbm_to_vmem [thread:$0]  %s5117_s7, 1024, %s46_s10, [#allocation5], %s4307_s19, %s4307_s19, %s4308_s20  }
  0x12   :  { %s4309_s23 = smov [#allocation2]   ;;  %s4258_s27 = scalar_lea.hbm %s5113_s3, 10240 }
  0x13   :  { %s27_s24 = sshll.u32 %s4309_s23, 4  ;;  %p4259_p8 = scmp.ne.s32.totalorder %s5113_s3, %s4258_s27  ;;  %s28_s24 = int_to_ptr.vmem [resolvable:$true] %s27_s24 }
  0x14   :  { %p4262_p9 = scmp.lt.u32.totalorder %s4258_s27, %s5113_s3 }
  0x16   :  { %p4264_p10 = pnand %p4262_p9, %p4259_p8 }
  0x18   :  { %4267 = shalt.err (!%p4264_p10)
}
  0x19   :  { %s4268_s12 = scalar_lea.vmem %s28_s24, 10240  ;;  %p4273_p12 = scmp.lt.s32.totalorder %s28_s24, %s28_s24 }
  0x1a   :  { %p4269_p11 = scmp.ne.s32.totalorder %s28_s24, %s4268_s12  ;;  %p4274_p13 = scmp.lt.s32.totalorder %s4268_s12, %s4268_s12 }
  0x1c   :  { %p4275_p0 = por %p4274_p13, %p4273_p12 }
  0x1e   :  { %p4276_p1 = pnand %p4275_p0, %p4269_p11 }
  0x20   :  { %4279 = shalt.err (!%p4276_p1)
}
  0x21   :  { %s4310_s7 = smov 128   ;;  %s4311_s10 = smov 8  }
  0x22   :  { %33 = dma.hbm_to_vmem [thread:$0]  %s5113_s3, 10240, %s28_s24, [#allocation3], %s4310_s7, %s4310_s7, %s4311_s10  }
  0x23   :  { %s4312_s15 = smov [#allocation6]   ;;  %s4280_s19 = scalar_lea.hbm %s5118_s8, 16 }
  0x24   :  { %s58_s16 = sshll.u32 %s4312_s15, 4  ;;  %p4281_p2 = scmp.ne.s32.totalorder %s5118_s8, %s4280_s19  ;;  %s59_s16 = int_to_ptr.vmem [resolvable:$true] %s58_s16 }
  0x25   :  { %p4284_p3 = scmp.lt.u32.totalorder %s4280_s19, %s5118_s8 }
  0x27   :  { %p4286_p4 = pnand %p4284_p3, %p4281_p2 }
  0x29   :  { %4289 = shalt.err (!%p4286_p4)
}
  0x2a   :  { %s4290_s25 = scalar_lea.vmem %s59_s16, 16  ;;  %s4294_s3 = scalar_lea.vmem %s59_s16, 32 }
  0x2b   :  { %p4291_p5 = scmp.ne.s32.totalorder %s59_s16, %s4290_s25  ;;  %p4295_p6 = scmp.lt.s32.totalorder %s59_s16, %s59_s16 }
  0x2c   :  { %p4296_p7 = scmp.lt.s32.totalorder %s4294_s3, %s4290_s25 }
  0x2e   :  { %p4297_p8 = por %p4296_p7, %p4295_p6 }
  0x30   :  { %p4298_p9 = pnand %p4297_p8, %p4291_p5 }
  0x32   :  { %4301 = shalt.err (!%p4298_p9)
}
  0x33   :  { %61 = dma.hbm_to_vmem [thread:$0]  %s5118_s8, 16, %s59_s16, [#allocation5]  }
  0x34   :  { %4302 = dma.done.wait [#allocation3], 10240  }
  0x35   :  { %4303 = vsyncadd [#allocation3], 4294957056 }
  0x36   :  { %4304 = dma.done.wait [#allocation5], 1040  }
  0x37   :  { %4305 = vsyncadd [#allocation5], 4294966256  ;;  %v4313_v0 = vmov 0   ;;  %v4046_v1 = vld [vmem:[%s5111_s1 + $0x24] ss:$8 sps:$4 sm:$0xff]   ;;  %vm204_vm0 = vcmask 1045504  }
  0x38   :  { %243 = vmatprep.mubr.bf16.mxu0 %v4313_v0  ;;  %283 = vmatprep.mubr.bf16.mxu1 %v4313_v0  ;;  %v4048_v2 = vld [vmem:[%s5111_s1 + $0x20] ss:$8 sps:$4 sm:$0xff]   ;;  %v4049_v3 = vld [vmem:[%s5111_s1 + $0x34] ss:$8 sps:$4 sm:$0x3f]   ;;  %vm185_vm1 = vcmask 228352  }
  0x39   :  { %211 = vmatprep.subr.bf16.mxu0 %v4046_v1  ;;  %3776 = vmatprep.subr.bf16.mxu1 %v4046_v1  ;;  %v4051_v4 = vld [vmem:[%s5111_s1 + $0x30] ss:$8 sps:$4 sm:$0x3f]   ;;  %v73_v5 = vld [vmem:[%s5110_s0 + $0x8] sm:$0xff]  ;;  %v76_v33 = vld [vmem:[%s5110_s0 + $0x20] sm:$0xff]  ;;  %vm4315_vm2 = vmmov 0  }
  0x3a   :  { %212 = vmatpush1.bf16.msra.mxu0 %v4048_v2  ;;  %3778 = vmatpush1.bf16.msra.mxu1 %v4048_v2  ;;  %v75_v6 = vld [vmem:[%s5110_s0 + $0x18] sm:$0xff]  ;;  %v89_v7 = vld [vmem:[%s5110_s0 + $0x88] sm:$0xff]  ;;  %v206_v8 = vsel %vm204_vm0, %v4051_v4, 0  ;;  %v74_v32 = vld [vmem:[%s5110_s0 + $0x10] sm:$0xff] }
  0x3b   :  { %3287 = vmatprep.subr.msk.bf16.mxu0 %vm204_vm0, %v4049_v3  ;;  %3777 = vmatprep.subr.msk.bf16.mxu1 %vm204_vm0, %v4049_v3  ;;  %v91_v9 = vld [vmem:[%s5110_s0 + $0x98] sm:$0xff]  ;;  %v77_v10 = vld [vmem:[%s5110_s0 + $0x28] sm:$0xff]  ;;  %v4442_v14 = vpack.c.bf16 %v75_v6, %v73_v5  ;;  %v4512_v35 = vpack.c.bf16 %v76_v33, %v74_v32  ;;  %v78_v37 = vld [vmem:[%s5110_s0 + $0x30] sm:$0xff] }
  0x3c   :  { %v79_v11 = vld [vmem:[%s5110_s0 + $0x38] sm:$0xff]  ;;  %v4437_v12 = vpack.c.bf16 %v77_v10, %v75_v6  ;;  %v81_v13 = vld [vmem:[%s5110_s0 + $0x48] sm:$0xff]  ;;  %v4444_v15 = vpack.c.bf16 %v91_v9, %v89_v7  ;;  %v80_v38 = vld [vmem:[%s5110_s0 + $0x40] sm:$0xff]  ;;  %v4575_v53 = vpack.c.bf16 %v78_v37, %v76_v33 }
  0x3d   :  { %v4446_v16 = vpack.c.bf16 %v81_v13, %v79_v11  ;;  %v83_v17 = vld [vmem:[%s5110_s0 + $0x58] sm:$0xff]  ;;  %v85_v18 = vld [vmem:[%s5110_s0 + $0x68] sm:$0xff]  ;;  %v4483_v26 = vpack.c.bf16 %v79_v11, %v77_v10  ;;  %v4531_v40 = vpack.c.bf16 %v80_v38, %v78_v37  ;;  %v72_v41 = vld [vmem:[%s5110_s0] sm:$0xff] }
  0x3e   :  { %214 = vmatpush1.bf16.msra.mxu0 %v206_v8  ;;  %3779 = vmatpush1.bf16.msra.mxu1 %v206_v8  ;;  %v4054_v19 = vld [vmem:[%s5111_s1 + $0x4] ss:$8 sps:$4 sm:$0xff]   ;;  %v4457_v20 = vpack.c.bf16 %v85_v18, %v83_v17  ;;  %v4052_v21 = vld [vmem:[%s5111_s1] ss:$8 sps:$4 sm:$0xff]   ;;  %v4473_v23 = vld [vmem:[%s5110_s0 + $0xb8] sm:$0xff]  ;;  %v4510_v34 = vpack.c.bf16 %v83_v17, %v81_v13  ;;  %v3597_v44 = vpack.c.bf16 %v74_v32, %v72_v41 }
  0x3f   :  { %977 = vmatprep.subr.bf16.mxu1 %v4046_v1  ;;  %v93_v22 = vld [vmem:[%s5110_s0 + $0xa8] sm:$0xff]  ;;  %v4055_v24 = vld [vmem:[%s5111_s1 + $0x14] ss:$8 sps:$4 sm:$0x3f]   ;;  %376 = vmatprep.subr.bf16.mxu0 %v4054_v19  ;;  %v84_v43 = vld [vmem:[%s5110_s0 + $0x60] sm:$0xff] }
  0x40   :  { %v4057_v25 = vld [vmem:[%s5111_s1 + $0x10] ss:$8 sps:$4 sm:$0x3f]   ;;  %v4486_v27 = vpack.c.bf16 %v4473_v23, %v93_v22  ;;  %v4060_v31 = vld [vmem:[%s5111_s1 + $0x44] ss:$8 sps:$4 sm:$0xff]   ;;  %v4514_v36 = vpack.c.bf16 %v93_v22, %v91_v9 }
  0x41   :  { %3288 = vmatmul.mubr.msk.bf16.vlgmr.msra.gmra.mrb[0].mxu0 %vm185_vm1, %v4442_v14  ;;  %3292 = vmatmul.mubr.msk.bf16.vlgmr.msra.gmra.mrb[0].mxu1 %vm185_vm1, %v4444_v15  ;;  %v87_v28 = vld [vmem:[%s5110_s0 + $0x78] sm:$0xff]  ;;  %v371_v30 = vsel %vm204_vm0, %v4057_v25, 0  ;;  %v82_v42 = vld [vmem:[%s5110_s0 + $0x50] sm:$0xff]  ;;  %v4058_v46 = vld [vmem:[%s5111_s1 + $0x40] ss:$8 sps:$4 sm:$0xff]  }
  0x42   :  { %978 = vmatpush1.bf16.msra.mxu1 %v4048_v2  ;;  %253 = vmatprep.mubr.bf16.mxu0 %v4313_v0  ;;  %v4492_v29 = vpack.c.bf16 %v89_v7, %v87_v28  ;;  %v4529_v39 = vpack.c.bf16 %v87_v28, %v85_v18  ;;  %v4548_v45 = vpack.c.bf16 %v84_v43, %v82_v42  ;;  %v4061_v47 = vld [vmem:[%s5111_s1 + $0x54] ss:$8 sps:$4 sm:$0x3f]   ;;  %v4063_v48 = vld [vmem:[%s5111_s1 + $0x50] ss:$8 sps:$4 sm:$0x3f]  }
  0x43   :  { %293 = vmatprep.mubr.bf16.mxu1 %v4313_v0  ;;  %3369 = vmatprep.subr.msk.bf16.mxu1 %vm204_vm0, %v4049_v3  ;;  %v86_v49 = vld [vmem:[%s5110_s0 + $0x70] sm:$0xff]  ;;  %v88_v50 = vld [vmem:[%s5110_s0 + $0x80] sm:$0xff]  ;;  %v519_v52 = vsel %vm204_vm0, %v4063_v48, 0  ;;  %v4588_v57 = vpack.c.bf16 %v82_v42, %v80_v38  ;;  %v97_v11 = vld [vmem:[%s5110_s0 + $0xc8] sm:$0xff] }
  0x44   :  { %377 = vmatpush1.bf16.msra.mxu0 %v4052_v21  ;;  %v4066_v51 = vld [vmem:[%s5111_s1 + $0x64] ss:$8 sps:$4 sm:$0xff]   ;;  %v3606_v54 = vpack.c.bf16 %v88_v50, %v86_v49  ;;  %v90_v55 = vld [vmem:[%s5110_s0 + $0x90] sm:$0xff]  ;;  %v4603_v61 = vpack.c.bf16 %v86_v49, %v84_v43  ;;  %v4064_v2 = vld [vmem:[%s5111_s1 + $0x60] ss:$8 sps:$4 sm:$0xff]  }
  0x45   :  { %3304 = vmatprep.subr.msk.bf16.mxu0 %vm204_vm0, %v4055_v24  ;;  %v92_v56 = vld [vmem:[%s5110_s0 + $0xa0] sm:$0xff]  ;;  %v94_v59 = vld [vmem:[%s5110_s0 + $0xb0] sm:$0xff]  ;;  %v4611_v63 = vpack.c.bf16 %v90_v55, %v88_v50 }
  0x46   :  { %980 = vmatpush1.bf16.msra.mxu1 %v206_v8  ;;  %v3607_v58 = vpack.c.bf16 %v92_v56, %v90_v55  ;;  %v4596_v60 = vld [vmem:[%s5110_s0 + $0xc0] sm:$0xff]  ;;  %v4620_v1 = vpack.c.bf16 %v94_v59, %v92_v56  ;;  %v4067_v3 = vld [vmem:[%s5111_s1 + $0x74] ss:$8 sps:$4 sm:$0x3f]  }
  0x47   :  { %1070 = vmatprep.subr.bf16.mxu1 %v4054_v19  ;;  %v3608_v62 = vpack.c.bf16 %v4596_v60, %v94_v59  ;;  %v4069_v4 = vld [vmem:[%s5111_s1 + $0x70] ss:$8 sps:$4 sm:$0x3f]   ;;  %v4072_v6 = vld [vmem:[%s5111_s1 + $0x84] ss:$8 sps:$4 sm:$0xff]  }
  0x48   :  { %379 = vmatpush1.bf16.msra.mxu0 %v371_v30  ;;  %v691_v5 = vsel %vm204_vm0, %v4069_v4, 0  ;;  %v4070_v7 = vld [vmem:[%s5111_s1 + $0x80] ss:$8 sps:$4 sm:$0xff]   ;;  %v4073_v8 = vld [vmem:[%s5111_s1 + $0x94] ss:$8 sps:$4 sm:$0x3f]  }
  0x49   :  { %3289 = vmatmul.mubr.msk.bf16.gmra.mrb[4].mxu0 %vm185_vm1, %v4483_v26  ;;  %3293 = vmatmul.mubr.msk.bf16.gmra.mrb[4].mxu1 %vm185_vm1, %v4486_v27  ;;  %v4075_v9 = vld [vmem:[%s5111_s1 + $0x90] ss:$8 sps:$4 sm:$0x3f]   ;;  %v4078_v28 = vld [vmem:[#allocation2 + $0x84] ss:$8 sps:$4 sm:$0xff]  }
  0x4a   :  { %263 = vmatprep.mubr.bf16.mxu0 %v4313_v0  ;;  %1009 = vmatprep.mubr.bf16.mxu1 %v4313_v0  ;;  %v843_v10 = vsel %vm204_vm0, %v4075_v9, 0  ;;  %v98_v13 = vld [vmem:[%s5110_s0 + $0xd0] sm:$0xff]  ;;  %v4090_v33 = vld [vmem:[#allocation2 + $0xc4] ss:$8 sps:$4 sm:$0xff]   ;;  %v4094_v38 = vld [vmem:[#allocation2 + $0xe0] ss:$8 sps:$4 sm:$0xff]  }
  0x4b   :  { %524 = vmatprep.subr.bf16.mxu0 %v4060_v31  ;;  %v4087_v32 = vld [vmem:[#allocation2 + $0xb4] ss:$8 sps:$4 sm:$0xff]   ;;  %v4096_v37 = vld [vmem:[#allocation2 + $0xe4] ss:$8 sps:$4 sm:$0xff]  }
  0x4c   :  { %v4102_v41 = vld [vmem:[#allocation2 + $0x4] ss:$8 sps:$4 sm:$0xff]  }
  0x51   :  { %3290 = vmatmul.mubr.msk.bf16.gmra.mrb[8].mxu0 %vm185_vm1, %v4510_v34  ;;  %3370 = vmatmul.mubr.msk.bf16.vlgmr.msra.gmra.mrb[8].mxu1 %vm185_vm1, %v4512_v35 }
  0x52   :  { %1071 = vmatpush1.bf16.msra.mxu1 %v4052_v21  ;;  %273 = vmatprep.mubr.bf16.mxu0 %v4313_v0 }
  0x53   :  { %1019 = vmatprep.mubr.bf16.mxu1 %v4313_v0  ;;  %3376 = vmatprep.subr.msk.bf16.mxu1 %vm204_vm0, %v4055_v24  ;;  %v99_v24 = vld [vmem:[%s5110_s0 + $0xd8] sm:$0xff] }
  0x54   :  { %v3616_v25 = vpack.c.bf16 %v99_v24, %v97_v11 }
  0x56   :  { %1073 = vmatpush1.bf16.msra.mxu1 %v371_v30  ;;  %v4084_v30 = vld [vmem:[#allocation2 + $0xa4] ss:$8 sps:$4 sm:$0xff]  }
  0x57   :  { %1163 = vmatprep.subr.bf16.mxu1 %v4060_v31  ;;  %v4085_v31 = vld [vmem:[#allocation2 + $0xb0] ss:$8 sps:$4 sm:$0xff]  }
  0x59   :  { %3291 = vmatmul.mubr.msk.bf16.gmra.mrb[12].mxu0 %vm185_vm1, %v4529_v39  ;;  %3371 = vmatmul.mubr.msk.bf16.gmra.mrb[12].mxu1 %vm185_vm1, %v4531_v40 }
  0x5a   :  { %408 = vmatprep.mubr.bf16.mxu0 %v4313_v0  ;;  %1029 = vmatprep.mubr.bf16.mxu1 %v4313_v0 }
  0x61   :  { %3305 = vmatmul.mubr.msk.bf16.vlgmr.msra.gmra.mrb[0].mxu0 %vm185_vm1, %v3597_v44  ;;  %3372 = vmatmul.mubr.msk.bf16.gmra.mrb[16].mxu1 %vm185_vm1, %v4548_v45 }
  0x62   :  { %418 = vmatprep.mubr.bf16.mxu0 %v4313_v0  ;;  %1039 = vmatprep.mubr.bf16.mxu1 %v4313_v0 }
  0x63   :  { %525 = vmatpush1.bf16.msra.mxu0 %v4058_v46 }
  0x64   :  { %3325 = vmatprep.subr.msk.bf16.mxu0 %vm204_vm0, %v4061_v47 }
  0x67   :  { %527 = vmatpush1.bf16.msra.mxu0 %v519_v52 }
  0x68   :  { %696 = vmatprep.subr.bf16.mxu0 %v4066_v51 }
  0x69   :  { %3306 = vmatmul.mubr.msk.bf16.gmra.mrb[4].mxu0 %vm185_vm1, %v4575_v53  ;;  %3373 = vmatmul.mubr.msk.bf16.gmra.mrb[20].mxu1 %vm185_vm1, %v3606_v54 }
  0x6a   :  { %428 = vmatprep.mubr.bf16.mxu0 %v4313_v0  ;;  %1049 = vmatprep.mubr.bf16.mxu1 %v4313_v0 }
  0x71   :  { %3307 = vmatmul.mubr.msk.bf16.gmra.mrb[8].mxu0 %vm185_vm1, %v4588_v57  ;;  %3374 = vmatmul.mubr.msk.bf16.gmra.mrb[24].mxu1 %vm185_vm1, %v3607_v58 }
  0x72   :  { %438 = vmatprep.mubr.bf16.mxu0 %v4313_v0  ;;  %1059 = vmatprep.mubr.bf16.mxu1 %v4313_v0 }
  0x79   :  { %3308 = vmatmul.mubr.msk.bf16.gmra.mrb[12].mxu0 %vm185_vm1, %v4603_v61  ;;  %3375 = vmatmul.mubr.msk.bf16.gmra.mrb[28].mxu1 %vm185_vm1, %v3608_v62 }
  0x7a   :  { %448 = vmatprep.mubr.bf16.mxu0 %v4313_v0  ;;  %1102 = vmatprep.mubr.bf16.mxu1 %v4313_v0 }
  0x81   :  { %3309 = vmatmul.mubr.msk.bf16.gmra.mrb[16].mxu0 %vm185_vm1, %v4611_v63  ;;  %3377 = vmatmul.mubr.msk.bf16.vlgmr.msra.gmra.mrb[8].mxu1 %vm185_vm1, %v4442_v14  ;;  %v3615_v14 = vpack.c.bf16 %v98_v13, %v4596_v60 }
  0x82   :  { %1164 = vmatpush1.bf16.msra.mxu1 %v4058_v46  ;;  %458 = vmatprep.mubr.bf16.mxu0 %v4313_v0 }
  0x83   :  { %1112 = vmatprep.mubr.bf16.mxu1 %v4313_v0  ;;  %3383 = vmatprep.subr.msk.bf16.mxu1 %vm204_vm0, %v4061_v47 }
  0x86   :  { %1166 = vmatpush1.bf16.msra.mxu1 %v519_v52 }
  0x87   :  { %1280 = vmatprep.subr.bf16.mxu1 %v4066_v51 }
  0x89   :  { %3310 = vmatmul.mubr.msk.bf16.gmra.mrb[20].mxu0 %vm185_vm1, %v4620_v1  ;;  %3378 = vmatmul.mubr.msk.bf16.gmra.mrb[12].mxu1 %vm185_vm1, %v4483_v26 }
  0x8a   :  { %556 = vmatprep.mubr.bf16.mxu0 %v4313_v0  ;;  %1122 = vmatprep.mubr.bf16.mxu1 %v4313_v0 }
  0x91   :  { %3326 = vmatmul.mubr.msk.bf16.vlgmr.msra.gmra.mrb[0].mxu0 %vm185_vm1, %v4512_v35  ;;  %3379 = vmatmul.mubr.msk.bf16.gmra.mrb[16].mxu1 %vm185_vm1, %v4510_v34  ;;  %v4093_v35 = vld [vmem:[#allocation2 + $0xd4] ss:$8 sps:$4 sm:$0xff]  }
  0x92   :  { %566 = vmatprep.mubr.bf16.mxu0 %v4313_v0  ;;  %1132 = vmatprep.mubr.bf16.mxu1 %v4313_v0 }
  0x93   :  { %697 = vmatpush1.bf16.msra.mxu0 %v4064_v2 }
  0x94   :  { %3346 = vmatprep.subr.msk.bf16.mxu0 %vm204_vm0, %v4067_v3 }
  0x97   :  { %699 = vmatpush1.bf16.msra.mxu0 %v691_v5 }
  0x98   :  { %848 = vmatprep.subr.bf16.mxu0 %v4072_v6 }
  0x99   :  { %3327 = vmatmul.mubr.msk.bf16.gmra.mrb[4].mxu0 %vm185_vm1, %v4531_v40  ;;  %3380 = vmatmul.mubr.msk.bf16.gmra.mrb[20].mxu1 %vm185_vm1, %v4529_v39  ;;  %v4097_v40 = vld [vmem:[#allocation2 + $0xf0] ss:$8 sps:$4 sm:$0xff]  }
  0x9a   :  { %576 = vmatprep.mubr.bf16.mxu0 %v4313_v0  ;;  %1142 = vmatprep.mubr.bf16.mxu1 %v4313_v0 }
  0xa1   :  { %3328 = vmatmul.mubr.msk.bf16.gmra.mrb[8].mxu0 %vm185_vm1, %v4548_v45  ;;  %3381 = vmatmul.mubr.msk.bf16.gmra.mrb[24].mxu1 %vm185_vm1, %v4444_v15 }
  0xa2   :  { %586 = vmatprep.mubr.bf16.mxu0 %v4313_v0  ;;  %1152 = vmatprep.mubr.bf16.mxu1 %v4313_v0 }
  0xa9   :  { %3329 = vmatmul.mubr.msk.bf16.gmra.mrb[12].mxu0 %vm185_vm1, %v3606_v54  ;;  %3382 = vmatmul.mubr.msk.bf16.gmra.mrb[28].mxu1 %vm185_vm1, %v4486_v27 }
  0xaa   :  { %596 = vmatprep.mubr.bf16.mxu0 %v4313_v0  ;;  %1195 = vmatprep.mubr.bf16.mxu1 %v4313_v0 }
  0xb1   :  { %3330 = vmatmul.mubr.msk.bf16.gmra.mrb[16].mxu0 %vm185_vm1, %v3607_v58  ;;  %3384 = vmatmul.mubr.msk.bf16.vlgmr.msra.gmra.mrb[8].mxu1 %vm185_vm1, %v4437_v12 }
  0xb2   :  { %1281 = vmatpush1.bf16.msra.mxu1 %v4064_v2  ;;  %606 = vmatprep.mubr.bf16.mxu0 %v4313_v0 }
  0xb3   :  { %1205 = vmatprep.mubr.bf16.mxu1 %v4313_v0  ;;  %3390 = vmatprep.subr.msk.bf16.mxu1 %vm204_vm0, %v4067_v3 }
  0xb6   :  { %1283 = vmatpush1.bf16.msra.mxu1 %v691_v5 }
  0xb7   :  { %1403 = vmatprep.subr.bf16.mxu1 %v4072_v6 }
  0xb9   :  { %3331 = vmatmul.mubr.msk.bf16.gmra.mrb[20].mxu0 %vm185_vm1, %v3608_v62  ;;  %3385 = vmatmul.mubr.msk.bf16.gmra.mrb[12].mxu1 %vm185_vm1, %v4446_v16 }
  0xba   :  { %728 = vmatprep.mubr.bf16.mxu0 %v4313_v0  ;;  %1215 = vmatprep.mubr.bf16.mxu1 %v4313_v0 }
  0xc1   :  { %3347 = vmatmul.mubr.msk.bf16.vlgmr.msra.gmra.mrb[0].mxu0 %vm185_vm1, %v4437_v12  ;;  %3386 = vmatmul.mubr.msk.bf16.gmra.mrb[16].mxu1 %vm185_vm1, %v4457_v20  ;;  %v3614_v12 = vpack.c.bf16 %v97_v11, %v4473_v23 }
  0xc2   :  { %738 = vmatprep.mubr.bf16.mxu0 %v4313_v0  ;;  %1225 = vmatprep.mubr.bf16.mxu1 %v4313_v0 }
  0xc3   :  { %849 = vmatpush1.bf16.msra.mxu0 %v4070_v7 }
  0xc4   :  { %3362 = vmatprep.subr.msk.bf16.mxu0 %vm204_vm0, %v4073_v8 }
  0xc7   :  { %851 = vmatpush1.bf16.msra.mxu0 %v843_v10 }
  0xc8   :  { %1716 = vmatprep.subr.bf16.mxu0 %v4078_v28 }
  0xc9   :  { %3348 = vmatmul.mubr.msk.bf16.gmra.mrb[4].mxu0 %vm185_vm1, %v4446_v16  ;;  %3387 = vmatmul.mubr.msk.bf16.gmra.mrb[20].mxu1 %vm185_vm1, %v4492_v29 }
  0xca   :  { %748 = vmatprep.mubr.bf16.mxu0 %v4313_v0  ;;  %1235 = vmatprep.mubr.bf16.mxu1 %v4313_v0 }
  0xd1   :  { %3349 = vmatmul.mubr.msk.bf16.gmra.mrb[8].mxu0 %vm185_vm1, %v4457_v20  ;;  %3388 = vmatmul.mubr.msk.bf16.gmra.mrb[24].mxu1 %vm185_vm1, %v4514_v36 }
  0xd2   :  { %758 = vmatprep.mubr.bf16.mxu0 %v4313_v0  ;;  %1245 = vmatprep.mubr.bf16.mxu1 %v4313_v0 }
  0xd9   :  { %3350 = vmatmul.mubr.msk.bf16.gmra.mrb[12].mxu0 %vm185_vm1, %v4492_v29  ;;  %3389 = vmatmul.mubr.msk.bf16.gmra.mrb[28].mxu1 %vm185_vm1, %v3614_v12  ;;  %v4081_v29 = vld [vmem:[#allocation2 + $0x94] ss:$8 sps:$4 sm:$0xff]  }
  0xda   :  { %768 = vmatprep.mubr.bf16.mxu0 %v4313_v0  ;;  %1312 = vmatprep.mubr.bf16.mxu1 %v4313_v0 }
  0xe1   :  { %3351 = vmatmul.mubr.msk.bf16.gmra.mrb[16].mxu0 %vm185_vm1, %v4514_v36  ;;  %3391 = vmatmul.mubr.msk.bf16.vlgmr.msra.gmra.mrb[8].mxu1 %vm185_vm1, %v4575_v53  ;;  %v4091_v36 = vld [vmem:[#allocation2 + $0xd0] ss:$8 sps:$4 sm:$0xff]  }
  0xe2   :  { %1404 = vmatpush1.bf16.msra.mxu1 %v4070_v7  ;;  %778 = vmatprep.mubr.bf16.mxu0 %v4313_v0 }
  0xe3   :  { %1322 = vmatprep.mubr.bf16.mxu1 %v4313_v0  ;;  %3398 = vmatprep.subr.msk.bf16.mxu1 %vm204_vm0, %v4073_v8 }
  0xe6   :  { %1406 = vmatpush1.bf16.msra.mxu1 %v843_v10 }
  0xe7   :  { %2394 = vmatprep.subr.bf16.mxu1 %v4078_v28 }
  0xe9   :  { %3352 = vmatmul.mubr.msk.bf16.gmra.mrb[20].mxu0 %vm185_vm1, %v3614_v12  ;;  %3392 = vmatmul.mubr.msk.bf16.gmra.mrb[12].mxu1 %vm185_vm1, %v4588_v57 }
  0xea   :  { %880 = vmatprep.mubr.bf16.mxu0 %v4313_v0  ;;  %1332 = vmatprep.mubr.bf16.mxu1 %v4313_v0 }
  0xf1   :  { %3363 = vmatmul.mubr.msk.bf16.vlgmr.msra.gmra.mrb[0].mxu0 %vm185_vm1, %v4575_v53  ;;  %3393 = vmatmul.mubr.msk.bf16.gmra.mrb[16].mxu1 %vm185_vm1, %v4603_v61 }
  0xf2   :  { %890 = vmatprep.mubr.bf16.mxu0 %v4313_v0  ;;  %1342 = vmatprep.mubr.bf16.mxu1 %v4313_v0 }
  0xf9   :  { %3364 = vmatmul.mubr.msk.bf16.gmra.mrb[4].mxu0 %vm185_vm1, %v4588_v57  ;;  %3394 = vmatmul.mubr.msk.bf16.gmra.mrb[20].mxu1 %vm185_vm1, %v4611_v63 }
  0xfa   :  { %900 = vmatprep.mubr.bf16.mxu0 %v4313_v0  ;;  %1352 = vmatprep.mubr.bf16.mxu1 %v4313_v0 }
 0x101   :  { %3365 = vmatmul.mubr.msk.bf16.gmra.mrb[8].mxu0 %vm185_vm1, %v4603_v61  ;;  %3395 = vmatmul.mubr.msk.bf16.gmra.mrb[24].mxu1 %vm185_vm1, %v4620_v1 }
 0x102   :  { %910 = vmatprep.mubr.bf16.mxu0 %v4313_v0  ;;  %1362 = vmatprep.mubr.bf16.mxu1 %v4313_v0 }
 0x109   :  { %3366 = vmatmul.mubr.msk.bf16.gmra.mrb[12].mxu0 %vm185_vm1, %v4611_v63  ;;  %3396 = vmatmul.mubr.msk.bf16.gmra.mrb[28].mxu1 %vm185_vm1, %v3615_v14 }
 0x10a   :  { %920 = vmatprep.mubr.bf16.mxu0 %v4313_v0  ;;  %1435 = vmatprep.mubr.bf16.mxu1 %v4313_v0 }
 0x111   :  { %3367 = vmatmul.mubr.msk.bf16.gmra.mrb[16].mxu0 %vm185_vm1, %v4620_v1  ;;  %3399 = vmatmul.mubr.msk.bf16.vlgmr.msra.gmra.mrb[8].mxu1 %vm185_vm1, %v4483_v26  ;;  %v4076_v26 = vld [vmem:[#allocation2 + $0x80] ss:$8 sps:$4 sm:$0xff]  }
 0x112   :  { %930 = vmatprep.mubr.bf16.mxu0 %v4313_v0  ;;  %1445 = vmatprep.mubr.bf16.mxu1 %v4313_v0 }
 0x113   :  { %1717 = vmatpush1.bf16.msra.mxu0 %v4076_v26  ;;  %2395 = vmatpush1.bf16.msra.mxu1 %v4076_v26 }
 0x114   :  { %v4759_v16 = vpop.f32.mrb[0].mxu1  ;;  %1718 = vmatprep.subr.bf16.mxu0 %v4081_v29  ;;  %2396 = vmatprep.subr.bf16.mxu1 %v4081_v29 }
 0x115   :  { %v4761_v17 = vpop.f32.mrb[1].mxu1 }
 0x116   :  { %v4763_v18 = vpop.f32.mrb[2].mxu1 }
 0x117   :  { %v4765_v19 = vpop.f32.mrb[3].mxu1 }
 0x119   :  { %3368 = vmatmul.mubr.msk.bf16.gmra.mrb[20].mxu0 %vm185_vm1, %v3615_v14  ;;  %3400 = vmatmul.mubr.msk.bf16.gmra.mrb[12].mxu1 %vm185_vm1, %v4510_v34  ;;  %v4088_v34 = vld [vmem:[#allocation2 + $0xc0] ss:$8 sps:$4 sm:$0xff]  }
 0x11a   :  { %1455 = vmatprep.mubr.bf16.mxu1 %v4313_v0  ;;  %1748 = vmatprep.mubr.bf16.mxu0 %v4313_v0 }
 0x11c   :  { %v4772_v20 = vpop.f32.mrb[4].mxu1 }
 0x11d   :  { %v4774_v21 = vpop.f32.mrb[5].mxu1 }
 0x11e   :  { %v4776_v22 = vpop.f32.mrb[6].mxu1 }
 0x11f   :  { %v4778_v23 = vpop.f32.mrb[7].mxu1 }
 0x121   :  { %3401 = vmatmul.mubr.msk.bf16.gmra.mrb[16].mxu1 %vm185_vm1, %v4529_v39  ;;  %v4099_v39 = vld [vmem:[#allocation2 + $0xf4] ss:$8 sps:$4 sm:$0xff]  }
 0x122   :  { %1465 = vmatprep.mubr.bf16.mxu1 %v4313_v0 }
 0x129   :  { %3402 = vmatmul.mubr.msk.bf16.gmra.mrb[20].mxu1 %vm185_vm1, %v4444_v15  ;;  %v4079_v15 = vld [vmem:[#allocation2 + $0x90] ss:$8 sps:$4 sm:$0xff]  }
 0x12a   :  { %1475 = vmatprep.mubr.bf16.mxu1 %v4313_v0  ;;  %1719 = vmatpush1.bf16.msra.mxu0 %v4079_v15 }
 0x12b   :  { %2397 = vmatpush1.bf16.msra.mxu1 %v4079_v15  ;;  %1720 = vmatprep.subr.bf16.mxu0 %v4084_v30  ;;  %v4837_v15 = vld [vmem:[%s5112_s2] ss:$0 sm:$0xff] }
 0x12c   :  { %2398 = vmatprep.subr.bf16.mxu1 %v4084_v30 }
 0x131   :  { %3403 = vmatmul.mubr.msk.bf16.gmra.mrb[24].mxu1 %vm185_vm1, %v4486_v27  ;;  %v4082_v27 = vld [vmem:[#allocation2 + $0xa0] ss:$8 sps:$4 sm:$0xff]  }
 0x132   :  { %1485 = vmatprep.mubr.bf16.mxu1 %v4313_v0  ;;  %1721 = vmatpush1.bf16.msra.mxu0 %v4082_v27 }
 0x133   :  { %2399 = vmatpush1.bf16.msra.mxu1 %v4082_v27  ;;  %1722 = vmatprep.subr.bf16.mxu0 %v4087_v32 }
 0x134   :  { %2400 = vmatprep.subr.bf16.mxu1 %v4087_v32 }
 0x136   :  { %1723 = vmatpush1.bf16.msra.mxu0 %v4085_v31 }
 0x137   :  { %2401 = vmatpush1.bf16.msra.mxu1 %v4085_v31  ;;  %1724 = vmatprep.subr.bf16.mxu0 %v4090_v33 }
 0x138   :  { %2402 = vmatprep.subr.bf16.mxu1 %v4090_v33 }
 0x139   :  { %3404 = vmatmul.mubr.msk.bf16.gmra.mrb[28].mxu1 %vm185_vm1, %v3616_v25 }
 0x13a   :  { %2426 = vmatprep.mubr.bf16.mxu1 %v4313_v0  ;;  %1725 = vmatpush1.bf16.msra.mxu0 %v4088_v34 }
 0x13b   :  { %2403 = vmatpush1.bf16.msra.mxu1 %v4088_v34  ;;  %1726 = vmatprep.subr.bf16.mxu0 %v4093_v35 }
 0x13c   :  { %2404 = vmatprep.subr.bf16.mxu1 %v4093_v35 }
 0x13e   :  { %1727 = vmatpush1.bf16.msra.mxu0 %v4091_v36 }
 0x13f   :  { %2405 = vmatpush1.bf16.msra.mxu1 %v4091_v36  ;;  %1728 = vmatprep.subr.bf16.mxu0 %v4096_v37 }
 0x140   :  { %2406 = vmatprep.subr.bf16.mxu1 %v4096_v37 }
 0x142   :  { %1729 = vmatpush1.bf16.msra.mxu0 %v4094_v38 }
 0x143   :  { %2407 = vmatpush1.bf16.msra.mxu1 %v4094_v38  ;;  %1730 = vmatprep.subr.bf16.mxu0 %v4099_v39 }
 0x144   :  { %2408 = vmatprep.subr.bf16.mxu1 %v4099_v39 }
 0x146   :  { %1731 = vmatpush1.bf16.msra.mxu0 %v4097_v40 }
 0x147   :  { %2409 = vmatpush1.bf16.msra.mxu1 %v4097_v40  ;;  %1853 = vmatprep.subr.bf16.mxu0 %v4102_v41 }
 0x148   :  { %2447 = vmatprep.subr.bf16.mxu1 %v4102_v41 }
 0x1c4   :  { %v882_v42 = vpop.f32.mrb[0].mxu0 }
 0x1c5   :  { %v884_v43 = vpop.f32.mrb[1].mxu0 }
 0x1c6   :  { %v965_v44 = vmax.f32 %v882_v42, %v884_v43  ;;  %v886_v45 = vpop.f32.mrb[2].mxu0 }
 0x1c7   :  { %v888_v46 = vpop.f32.mrb[3].mxu0 }
 0x1c8   :  { %v966_v47 = vmax.f32 %v886_v45, %v888_v46 }
 0x1cc   :  { %v892_v48 = vpop.f32.mrb[4].mxu0 }
 0x1cd   :  { %v894_v49 = vpop.f32.mrb[5].mxu0 }
 0x1ce   :  { %v967_v50 = vmax.f32 %v892_v48, %v894_v49  ;;  %v896_v51 = vpop.f32.mrb[6].mxu0 }
 0x1cf   :  { %v898_v52 = vpop.f32.mrb[7].mxu0 }
 0x1d0   :  { %v968_v53 = vmax.f32 %v896_v51, %v898_v52 }
 0x1d4   :  { %v4794_v54 = vpop.f32.mrb[8].mxu0 }
 0x1d5   :  { %v4796_v55 = vpop.f32.mrb[9].mxu0 }
 0x1d6   :  { %v969_v56 = vmax.f32 %v4794_v54, %v4796_v55  ;;  %v4800_v57 = vpop.f32.mrb[10].mxu0  ;;  %v4108_v54 = vld [vmem:[#allocation2 + $0x24] ss:$8 sps:$4 sm:$0xff]  }
 0x1d7   :  { %v4802_v58 = vpop.f32.mrb[11].mxu0 }
 0x1d8   :  { %v970_v59 = vmax.f32 %v4800_v57, %v4802_v58  ;;  %v4106_v58 = vld [vmem:[#allocation2 + $0x20] ss:$8 sps:$4 sm:$0xff]  }
 0x1dc   :  { %v4806_v60 = vpop.f32.mrb[12].mxu0 }
 0x1dd   :  { %v4808_v61 = vpop.f32.mrb[13].mxu0 }
 0x1de   :  { %v971_v62 = vmax.f32 %v4806_v60, %v4808_v61  ;;  %v4812_v63 = vpop.f32.mrb[14].mxu0 }
 0x1df   :  { %v4814_v1 = vpop.f32.mrb[15].mxu0 }
 0x1e0   :  { %v972_v2 = vmax.f32 %v4812_v63, %v4814_v1  ;;  %v4112_v1 = vld [vmem:[#allocation2 + $0x40] ss:$8 sps:$4 sm:$0xff]  }
 0x1e4   :  { %v922_v3 = vpop.f32.mrb[16].mxu0  ;;  %v1437_v4 = vpop.f32.mrb[8].mxu1 }
 0x1e5   :  { %v4819_v5 = vadd.f32 %v922_v3, %v4759_v16  ;;  %v924_v6 = vpop.f32.mrb[17].mxu0  ;;  %v1439_v7 = vpop.f32.mrb[9].mxu1 }
 0x1e6   :  { %v4822_v8 = vadd.f32 %v924_v6, %v4761_v17  ;;  %v1520_v9 = vmax.f32 %v1437_v4, %v1439_v7  ;;  %v926_v10 = vpop.f32.mrb[18].mxu0  ;;  %v1441_v11 = vpop.f32.mrb[10].mxu1  ;;  %v4100_v4 = vld [vmem:[#allocation2] ss:$8 sps:$4 sm:$0xff]  }
 0x1e7   :  { %v4825_v12 = vadd.f32 %v926_v10, %v4763_v18  ;;  %v928_v13 = vpop.f32.mrb[19].mxu0  ;;  %v1443_v14 = vpop.f32.mrb[11].mxu1 }
 0x1e8   :  { %v973_v24 = vmax.f32 %v4819_v5, %v4822_v8  ;;  %v1532_v25 = vmax.f32 %v965_v44, %v1520_v9  ;;  %v4830_v16 = vadd.f32 %v928_v13, %v4765_v19  ;;  %v1521_v26 = vmax.f32 %v1441_v11, %v1443_v14  ;;  %v4105_v9 = vld [vmem:[#allocation2 + $0x14] ss:$8 sps:$4 sm:$0xff]   ;;  %v4103_v13 = vld [vmem:[#allocation2 + $0x10] ss:$8 sps:$4 sm:$0xff]  }
 0x1ea   :  { %v974_v17 = vmax.f32 %v4825_v12, %v4830_v16  ;;  %v1533_v28 = vmax.f32 %v966_v47, %v1521_v26  ;;  %v1551_v35 = vadd.f32 %v4837_v15, %v1532_v25 }
 0x1ec   :  { %v932_v18 = vpop.f32.mrb[20].mxu0  ;;  %v1447_v29 = vpop.f32.mrb[12].mxu1 }
 0x1ed   :  { %v4840_v27 = vadd.f32 %v932_v18, %v4772_v20  ;;  %v934_v30 = vpop.f32.mrb[21].mxu0  ;;  %v1449_v31 = vpop.f32.mrb[13].mxu1 }
 0x1ee   :  { %v4843_v19 = vadd.f32 %v934_v30, %v4774_v21  ;;  %v1522_v32 = vmax.f32 %v1447_v29, %v1449_v31  ;;  %v936_v33 = vpop.f32.mrb[22].mxu0  ;;  %v1451_v34 = vpop.f32.mrb[14].mxu1  ;;  %v1552_v21 = vadd.f32 %v4837_v15, %v1533_v28 }
 0x1ef   :  { %v4847_v36 = vadd.f32 %v936_v33, %v4776_v22  ;;  %v938_v37 = vpop.f32.mrb[23].mxu0  ;;  %v1453_v38 = vpop.f32.mrb[15].mxu1  ;;  %v1563_v22 = vmax.f32 %v1551_v35, 0.0  ;;  %v4109_v35 = vld [vmem:[#allocation2 + $0x30] ss:$8 sps:$4 sm:$0xff]  }
 0x1f0   :  { %v975_v39 = vmax.f32 %v4840_v27, %v4843_v19  ;;  %v1534_v20 = vmax.f32 %v967_v50, %v1522_v32  ;;  %v4852_v40 = vadd.f32 %v938_v37, %v4778_v23  ;;  %v1523_v41 = vmax.f32 %v1451_v34, %v1453_v38  ;;  %v4111_v32 = vld [vmem:[#allocation2 + $0x34] ss:$8 sps:$4 sm:$0xff]   ;;  %v4121_v27 = vld [vmem:[#allocation2 + $0x70] ss:$8 sps:$4 sm:$0xff]  }
 0x1f1   :  { %v1564_v49 = vmax.f32 %v1552_v21, 0.0 }
 0x1f2   :  { %v1553_v42 = vadd.f32 %v4837_v15, %v1534_v20  ;;  %v976_v43 = vmax.f32 %v4847_v36, %v4852_v40  ;;  %v1535_v44 = vmax.f32 %v968_v53, %v1523_v41  ;;  %v4127_v36 = vld [vmem:[#allocation2 + $0x110] ss:$8 sps:$4 sm:$0xff]   ;;  %v4130_v40 = vld [vmem:[#allocation2 + $0x120] ss:$8 sps:$4 sm:$0xff]  }
 0x1f4   :  { %v1565_v45 = vmax.f32 %v1553_v42, 0.0  ;;  %v1554_v46 = vadd.f32 %v4837_v15, %v1535_v44  ;;  %v1457_v47 = vpop.f32.mrb[16].mxu1 }
 0x1f5   :  { %v1459_v48 = vpop.f32.mrb[17].mxu1 }
 0x1f6   :  { %v4859_v50 = vpack.c.bf16 %v1565_v45, %v1563_v22  ;;  %v1566_v23 = vmax.f32 %v1554_v46, 0.0  ;;  %v1524_v51 = vmax.f32 %v1457_v47, %v1459_v48  ;;  %v1461_v52 = vpop.f32.mrb[18].mxu1  ;;  %v4115_v48 = vld [vmem:[#allocation2 + $0x50] ss:$8 sps:$4 sm:$0xff]  }
 0x1f7   :  { %v1463_v3 = vpop.f32.mrb[19].mxu1 }
 0x1f8   :  { %v4861_v6 = vpack.c.bf16 %v1566_v23, %v1564_v49  ;;  %v1536_v53 = vmax.f32 %v969_v56, %v1524_v51  ;;  %v1525_v7 = vmax.f32 %v1461_v52, %v1463_v3  ;;  %v4120_v49 = vld [vmem:[#allocation2 + $0x64] ss:$8 sps:$4 sm:$0xff]  }
 0x1fa   :  { %v1555_v10 = vadd.f32 %v4837_v15, %v1536_v53  ;;  %v1537_v11 = vmax.f32 %v970_v59, %v1525_v7  ;;  %1749 = vmatmul.mubr.bf16.vlgmr.msra.gmra.mrb[24].mxu0 %v4861_v6  ;;  %v4123_v7 = vld [vmem:[#allocation2 + $0x74] ss:$8 sps:$4 sm:$0xff]  }
 0x1fb   :  { %1854 = vmatpush1.bf16.msra.mxu0 %v4100_v4  ;;  %1758 = vmatprep.mubr.bf16.mxu0 %v4313_v0 }
 0x1fc   :  { %v1567_v14 = vmax.f32 %v1555_v10, 0.0  ;;  %v1556_v25 = vadd.f32 %v4837_v15, %v1537_v11  ;;  %v1467_v26 = vpop.f32.mrb[20].mxu1  ;;  %1855 = vmatprep.subr.bf16.mxu0 %v4105_v9 }
 0x1fd   :  { %v1469_v55 = vpop.f32.mrb[21].mxu1 }
 0x1fe   :  { %v4873_v56 = vpack.c.bf16 %v1567_v14, %v1565_v45  ;;  %v1568_v28 = vmax.f32 %v1556_v25, 0.0  ;;  %v1526_v18 = vmax.f32 %v1467_v26, %v1469_v55  ;;  %v1471_v29 = vpop.f32.mrb[22].mxu1  ;;  %v4117_v45 = vld [vmem:[#allocation2 + $0x54] ss:$8 sps:$4 sm:$0xff]   ;;  %v4124_v26 = vld [vmem:[#allocation2 + $0x100] ss:$8 sps:$4 sm:$0xff]  }
 0x1ff   :  { %1856 = vmatpush1.bf16.msra.mxu0 %v4103_v13  ;;  %v1473_v57 = vpop.f32.mrb[23].mxu1 }
 0x200   :  { %v4875_v59 = vpack.c.bf16 %v1568_v28, %v1566_v23  ;;  %v1538_v30 = vmax.f32 %v971_v62, %v1526_v18  ;;  %v1527_v31 = vmax.f32 %v1471_v29, %v1473_v57  ;;  %2427 = vmatmul.mubr.bf16.vlgmr.msra.gmra.mrb[32].mxu1 %v4873_v56  ;;  %1857 = vmatprep.subr.bf16.mxu0 %v4108_v54  ;;  %v4114_v62 = vld [vmem:[#allocation2 + $0x44] ss:$8 sps:$4 sm:$0xff]   ;;  %v4136_v18 = vld [vmem:[#allocation2 + $0x140] ss:$8 sps:$4 sm:$0xff]   ;;  %v4139_v29 = vld [vmem:[#allocation2 + $0x150] ss:$8 sps:$4 sm:$0xff]  }
 0x201   :  { %2448 = vmatpush1.bf16.msra.mxu1 %v4100_v4  ;;  %2436 = vmatprep.mubr.bf16.mxu1 %v4313_v0  ;;  %v4144_v57 = vld [vmem:[#allocation2 + $0x164] ss:$8 sps:$4 sm:$0xff]  }
 0x202   :  { %v1557_v33 = vadd.f32 %v4837_v15, %v1538_v30  ;;  %v1539_v34 = vmax.f32 %v972_v2, %v1527_v31  ;;  %2449 = vmatprep.subr.bf16.mxu1 %v4105_v9  ;;  %v4147_v30 = vld [vmem:[#allocation2 + $0x174] ss:$8 sps:$4 sm:$0xff]   ;;  %v4145_v31 = vld [vmem:[#allocation2 + $0x170] ss:$8 sps:$4 sm:$0xff]  }
 0x203   :  { %1858 = vmatpush1.bf16.msra.mxu0 %v4106_v58 }
 0x204   :  { %v1569_v37 = vmax.f32 %v1557_v33, 0.0  ;;  %v1558_v60 = vadd.f32 %v4837_v15, %v1539_v34  ;;  %v1477_v61 = vpop.f32.mrb[24].mxu1  ;;  %1859 = vmatprep.subr.bf16.mxu0 %v4111_v32  ;;  %v4148_v33 = vld [vmem:[#allocation2 + $0x180] ss:$8 sps:$4 sm:$0xff]   ;;  %v4153_v34 = vld [vmem:[#allocation2 + $0x194] ss:$8 sps:$4 sm:$0xff]  }
 0x205   :  { %2450 = vmatpush1.bf16.msra.mxu1 %v4103_v13  ;;  %v1479_v38 = vpop.f32.mrb[25].mxu1  ;;  %v4126_v13 = vld [vmem:[#allocation2 + $0x104] ss:$8 sps:$4 sm:$0xff]  }
 0x206   :  { %v1570_v20 = vmax.f32 %v1558_v60, 0.0  ;;  %v1528_v41 = vmax.f32 %v1477_v61, %v1479_v38  ;;  %v1481_v21 = vpop.f32.mrb[26].mxu1  ;;  %2451 = vmatprep.subr.bf16.mxu1 %v4108_v54  ;;  %v4887_v42 = vpack.c.bf16 %v1569_v37, %v1567_v14  ;;  %v4129_v54 = vld [vmem:[#allocation2 + $0x114] ss:$8 sps:$4 sm:$0xff]   ;;  %v4154_v60 = vld [vmem:[#allocation2 + $0x1a0] ss:$8 sps:$4 sm:$0xff]  }
 0x207   :  { %1860 = vmatpush1.bf16.msra.mxu0 %v4109_v35  ;;  %v1483_v63 = vpop.f32.mrb[27].mxu1  ;;  %v4159_v61 = vld [vmem:[#allocation2 + $0x1b4] ss:$8 sps:$4 sm:$0xff]   ;;  %v4160_v38 = vld [vmem:[#allocation2 + $0x1c0] ss:$8 sps:$4 sm:$0xff]  }
 0x208   :  { %v1540_v2 = vmax.f32 %v973_v24, %v1528_v41  ;;  %v1529_v44 = vmax.f32 %v1481_v21, %v1483_v63  ;;  %1861 = vmatprep.subr.bf16.mxu0 %v4114_v62  ;;  %v4892_v22 = vpack.c.bf16 %v1570_v20, %v1568_v28  ;;  %v4138_v28 = vld [vmem:[#allocation2 + $0x144] ss:$8 sps:$4 sm:$0xff]   ;;  %v4163_v41 = vld [vmem:[#allocation2 + $0x1d0] ss:$8 sps:$4 sm:$0xff]   ;;  %v4166_v63 = vld [vmem:[#allocation2 + $0x1e0] ss:$8 sps:$4 sm:$0xff]  }
 0x209   :  { %2452 = vmatpush1.bf16.msra.mxu1 %v4106_v58  ;;  %v4142_v58 = vld [vmem:[#allocation2 + $0x160] ss:$8 sps:$4 sm:$0xff]   ;;  %v4168_v21 = vld [vmem:[#allocation2 + $0x1e4] ss:$8 sps:$4 sm:$0xff]  }
 0x20a   :  { %v1559_v46 = vadd.f32 %v4837_v15, %v1540_v2  ;;  %v1541_v47 = vmax.f32 %v974_v17, %v1529_v44  ;;  %1759 = vmatmul.mubr.bf16.gmra.mrb[28].mxu0 %v4892_v22  ;;  %2453 = vmatprep.subr.bf16.mxu1 %v4111_v32  ;;  %v4118_v17 = vld [vmem:[#allocation2 + $0x60] ss:$8 sps:$4 sm:$0xff]   ;;  %v4150_v32 = vld [vmem:[#allocation2 + $0x184] ss:$8 sps:$4 sm:$0xff]   ;;  %v4169_v2 = vld [vmem:[#allocation2 + $0x1f0] ss:$8 sps:$4 sm:$0xff]  }
 0x20b   :  { %1862 = vmatpush1.bf16.msra.mxu0 %v4112_v1  ;;  %1885 = vmatprep.mubr.bf16.mxu0 %v4313_v0  ;;  %v4174_v44 = vld [vmem:[#allocation2 + $0x204] ss:$8 sps:$4 sm:$0xff]  }
 0x20c   :  { %v1571_v5 = vmax.f32 %v1559_v46, 0.0  ;;  %v1560_v8 = vadd.f32 %v4837_v15, %v1541_v47  ;;  %v1487_v24 = vpop.f32.mrb[28].mxu1  ;;  %1863 = vmatprep.subr.bf16.mxu0 %v4117_v45  ;;  %v4177_v46 = vld [vmem:[#allocation2 + $0x214] ss:$8 sps:$4 sm:$0xff]   ;;  %v4175_v47 = vld [vmem:[#allocation2 + $0x210] ss:$8 sps:$4 sm:$0xff]  }
 0x20d   :  { %2454 = vmatpush1.bf16.msra.mxu1 %v4109_v35  ;;  %v1489_v23 = vpop.f32.mrb[29].mxu1  ;;  %v4151_v35 = vld [vmem:[#allocation2 + $0x190] ss:$8 sps:$4 sm:$0xff]  }
 0x20e   :  { %v1572_v51 = vmax.f32 %v1560_v8, 0.0  ;;  %v1530_v52 = vmax.f32 %v1487_v24, %v1489_v23  ;;  %v1491_v3 = vpop.f32.mrb[30].mxu1  ;;  %2455 = vmatprep.subr.bf16.mxu1 %v4114_v62  ;;  %v4901_v12 = vpack.c.bf16 %v1571_v5, %v1569_v37  ;;  %v4156_v37 = vld [vmem:[#allocation2 + $0x1a4] ss:$8 sps:$4 sm:$0xff]   ;;  %v4183_v8 = vld [vmem:[#allocation2 + $0x234] ss:$8 sps:$4 sm:$0xff]  }
 0x20f   :  { %1864 = vmatpush1.bf16.msra.mxu0 %v4115_v48  ;;  %v1493_v16 = vpop.f32.mrb[31].mxu1  ;;  %v4162_v62 = vld [vmem:[#allocation2 + $0x1c4] ss:$8 sps:$4 sm:$0xff]   ;;  %v4189_v23 = vld [vmem:[#allocation2 + $0x254] ss:$8 sps:$4 sm:$0xff]  }
 0x210   :  { %v1542_v4 = vmax.f32 %v975_v39, %v1530_v52  ;;  %v1531_v53 = vmax.f32 %v1491_v3, %v1493_v16  ;;  %2437 = vmatmul.mubr.bf16.gmra.mrb[36].mxu1 %v4901_v12  ;;  %1865 = vmatprep.subr.bf16.mxu0 %v4120_v49  ;;  %v4907_v9 = vpack.c.bf16 %v1572_v51, %v1570_v20  ;;  %v4165_v20 = vld [vmem:[#allocation2 + $0x1d4] ss:$8 sps:$4 sm:$0xff]   ;;  %v4186_v24 = vld [vmem:[#allocation2 + $0x244] ss:$8 sps:$4 sm:$0xff]   ;;  %v4190_v3 = vld [vmem:[#allocation2 + $0x260] ss:$8 sps:$4 sm:$0xff]  }
 0x211   :  { %2456 = vmatpush1.bf16.msra.mxu1 %v4112_v1  ;;  %2479 = vmatprep.mubr.bf16.mxu1 %v4313_v0  ;;  %v4171_v1 = vld [vmem:[#allocation2 + $0x1f4] ss:$8 sps:$4 sm:$0xff]   ;;  %v4192_v52 = vld [vmem:[#allocation2 + $0x264] ss:$8 sps:$4 sm:$0xff]   ;;  %v4193_v16 = vld [vmem:[#allocation2 + $0x270] ss:$8 sps:$4 sm:$0xff]  }
 0x212   :  { %v1561_v10 = vadd.f32 %v4837_v15, %v1542_v4  ;;  %v1543_v11 = vmax.f32 %v976_v43, %v1531_v53  ;;  %2457 = vmatprep.subr.bf16.mxu1 %v4117_v45  ;;  %v4135_v43 = vld [vmem:[#allocation2 + $0x134] ss:$8 sps:$4 sm:$0xff]   ;;  %v4172_v45 = vld [vmem:[#allocation2 + $0x200] ss:$8 sps:$4 sm:$0xff]   ;;  %v4314_v4 = vmov 0.0  }
 0x213   :  { %1866 = vmatpush1.bf16.msra.mxu0 %v4118_v17  ;;  %v4199_v53 = vld [vmem:[%s5115_s5 + $0x48] sm:$0xff]  }
 0x214   :  { %v1573_v19 = vmax.f32 %v1561_v10, 0.0  ;;  %v1562_v39 = vadd.f32 %v4837_v15, %v1543_v11  ;;  %1867 = vmatprep.subr.bf16.mxu0 %v4123_v7  ;;  %v4132_v15 = vld [vmem:[#allocation2 + $0x124] ss:$8 sps:$4 sm:$0xff]   ;;  %v4203_v10 = vld [vmem:[%s5115_s5 + $0x58] sm:$0xff]  }
 0x215   :  { %2458 = vmatpush1.bf16.msra.mxu1 %v4115_v48  ;;  %v4180_v48 = vld [vmem:[#allocation2 + $0x224] ss:$8 sps:$4 sm:$0xff]  }
 0x216   :  { %v1574_v14 = vmax.f32 %v1562_v39, 0.0  ;;  %2459 = vmatprep.subr.bf16.mxu1 %v4120_v49  ;;  %v4915_v25 = vpack.c.bf16 %v1573_v19, %v1571_v5  ;;  %v4178_v5 = vld [vmem:[#allocation2 + $0x220] ss:$8 sps:$4 sm:$0xff]  }
 0x217   :  { %1868 = vmatpush1.bf16.msra.mxu0 %v4121_v27  ;;  %v4184_v49 = vld [vmem:[#allocation2 + $0x240] ss:$8 sps:$4 sm:$0xff]  }
 0x218   :  { %2007 = vmatprep.subr.bf16.mxu0 %v4126_v13  ;;  %v4917_v55 = vpack.c.bf16 %v1574_v14, %v1572_v51  ;;  %v4187_v51 = vld [vmem:[#allocation2 + $0x250] ss:$8 sps:$4 sm:$0xff]   ;;  %v4204_v11 = vld [vmem:[%s5115_s5 + $0x20] sm:$0xff]   ;;  %v4206_v19 = vld [vmem:[%s5115_s5 + $0x28] sm:$0xff]  }
 0x219   :  { %2460 = vmatpush1.bf16.msra.mxu1 %v4118_v17  ;;  %v4197_v17 = vld [vmem:[%s5115_s5 + $0x40] sm:$0xff]   ;;  %v4207_v39 = vld [vmem:[%s5115_s5 + $0x68] sm:$0xff]   ;;  %v4209_v14 = vld [vmem:[%s5115_s5 + $0x70] sm:$0xff]  }
 0x21a   :  { %1886 = vmatmul.mubr.bf16.vlgmr.msra.gmra.mrb[24].mxu0 %v4859_v50  ;;  %2461 = vmatprep.subr.bf16.mxu1 %v4123_v7  ;;  %v4133_v50 = vld [vmem:[#allocation2 + $0x130] ss:$8 sps:$4 sm:$0xff]   ;;  %v4196_v7 = vld [vmem:[%s5115_s5] sm:$0xff]  }
 0x21b   :  { %2008 = vmatpush1.bf16.msra.mxu0 %v4124_v26  ;;  %1895 = vmatprep.mubr.bf16.mxu0 %v4313_v0 }
 0x21c   :  { %2009 = vmatprep.subr.bf16.mxu0 %v4129_v54 }
 0x21d   :  { %2462 = vmatpush1.bf16.msra.mxu1 %v4121_v27  ;;  %v4205_v27 = vld [vmem:[%s5115_s5 + $0x60] sm:$0xff]  }
 0x21e   :  { %2500 = vmatprep.subr.bf16.mxu1 %v4126_v13  ;;  %v4208_v13 = vld [vmem:[%s5115_s5 + $0x30] sm:$0xff]  }
 0x21f   :  { %2010 = vmatpush1.bf16.msra.mxu0 %v4127_v36 }
 0x220   :  { %2480 = vmatmul.mubr.bf16.vlgmr.msra.gmra.mrb[32].mxu1 %v4861_v6  ;;  %2011 = vmatprep.subr.bf16.mxu0 %v4132_v15  ;;  %v4141_v6 = vld [vmem:[#allocation2 + $0x154] ss:$8 sps:$4 sm:$0xff]  }
 0x221   :  { %2501 = vmatpush1.bf16.msra.mxu1 %v4124_v26  ;;  %2489 = vmatprep.mubr.bf16.mxu1 %v4313_v0  ;;  %v4211_v26 = vld [vmem:[%s5115_s5 + $0x78] sm:$0xff]  }
 0x222   :  { %1896 = vmatmul.mubr.bf16.gmra.mrb[28].mxu0 %v4887_v42  ;;  %2502 = vmatprep.subr.bf16.mxu1 %v4129_v54 }
 0x223   :  { %2012 = vmatpush1.bf16.msra.mxu0 %v4130_v40  ;;  %2039 = vmatprep.mubr.bf16.mxu0 %v4313_v0 }
 0x224   :  { %2013 = vmatprep.subr.bf16.mxu0 %v4135_v43 }
 0x225   :  { %2503 = vmatpush1.bf16.msra.mxu1 %v4127_v36 }
 0x226   :  { %2504 = vmatprep.subr.bf16.mxu1 %v4132_v15 }
 0x227   :  { %2014 = vmatpush1.bf16.msra.mxu0 %v4133_v50 }
 0x228   :  { %2490 = vmatmul.mubr.bf16.gmra.mrb[36].mxu1 %v4892_v22  ;;  %2015 = vmatprep.subr.bf16.mxu0 %v4138_v28 }
 0x229   :  { %2505 = vmatpush1.bf16.msra.mxu1 %v4130_v40  ;;  %2532 = vmatprep.mubr.bf16.mxu1 %v4313_v0 }
 0x22a   :  { %2506 = vmatprep.subr.bf16.mxu1 %v4135_v43 }
 0x22b   :  { %2016 = vmatpush1.bf16.msra.mxu0 %v4136_v18 }
 0x22c   :  { %2017 = vmatprep.subr.bf16.mxu0 %v4141_v6 }
 0x22d   :  { %2507 = vmatpush1.bf16.msra.mxu1 %v4133_v50 }
 0x22e   :  { %2508 = vmatprep.subr.bf16.mxu1 %v4138_v28 }
 0x22f   :  { %2018 = vmatpush1.bf16.msra.mxu0 %v4139_v29 }
 0x230   :  { %2019 = vmatprep.subr.bf16.mxu0 %v4144_v57 }
 0x231   :  { %2509 = vmatpush1.bf16.msra.mxu1 %v4136_v18 }
 0x232   :  { %2510 = vmatprep.subr.bf16.mxu1 %v4141_v6 }
 0x233   :  { %2020 = vmatpush1.bf16.msra.mxu0 %v4142_v58 }
 0x234   :  { %2021 = vmatprep.subr.bf16.mxu0 %v4147_v30 }
 0x235   :  { %2511 = vmatpush1.bf16.msra.mxu1 %v4139_v29 }
 0x236   :  { %2512 = vmatprep.subr.bf16.mxu1 %v4144_v57  ;;  %v5022_v57 = vld [vmem:[%s5114_s4] ss:$0 sm:$0xff] }
 0x237   :  { %2022 = vmatpush1.bf16.msra.mxu0 %v4145_v31 }
 0x238   :  { %2169 = vmatprep.subr.bf16.mxu0 %v4150_v32 }
 0x239   :  { %2513 = vmatpush1.bf16.msra.mxu1 %v4142_v58 }
 0x23a   :  { %2040 = vmatmul.mubr.bf16.vlgmr.msra.gmra.mrb[24].mxu0 %v4873_v56  ;;  %2514 = vmatprep.subr.bf16.mxu1 %v4147_v30  ;;  %v4157_v56 = vld [vmem:[#allocation2 + $0x1b0] ss:$8 sps:$4 sm:$0xff]  }
 0x23b   :  { %2170 = vmatpush1.bf16.msra.mxu0 %v4148_v33  ;;  %2049 = vmatprep.mubr.bf16.mxu0 %v4313_v0 }
 0x23c   :  { %2171 = vmatprep.subr.bf16.mxu0 %v4153_v34 }
 0x23d   :  { %2515 = vmatpush1.bf16.msra.mxu1 %v4145_v31 }
 0x23e   :  { %2561 = vmatprep.subr.bf16.mxu1 %v4150_v32 }
 0x23f   :  { %2172 = vmatpush1.bf16.msra.mxu0 %v4151_v35 }
 0x240   :  { %2533 = vmatmul.mubr.bf16.vlgmr.msra.gmra.mrb[32].mxu1 %v4875_v59  ;;  %2173 = vmatprep.subr.bf16.mxu0 %v4156_v37 }
 0x241   :  { %2562 = vmatpush1.bf16.msra.mxu1 %v4148_v33  ;;  %2542 = vmatprep.mubr.bf16.mxu1 %v4313_v0 }
 0x242   :  { %2050 = vmatmul.mubr.bf16.gmra.mrb[28].mxu0 %v4901_v12  ;;  %2563 = vmatprep.subr.bf16.mxu1 %v4153_v34  ;;  %v4195_v12 = vld [vmem:[#allocation2 + $0x274] ss:$8 sps:$4 sm:$0xff]  }
 0x243   :  { %2174 = vmatpush1.bf16.msra.mxu0 %v4154_v60  ;;  %2201 = vmatprep.mubr.bf16.mxu0 %v4313_v0 }
 0x244   :  { %2175 = vmatprep.subr.bf16.mxu0 %v4159_v61 }
 0x245   :  { %2564 = vmatpush1.bf16.msra.mxu1 %v4151_v35 }
 0x246   :  { %2565 = vmatprep.subr.bf16.mxu1 %v4156_v37 }
 0x247   :  { %2176 = vmatpush1.bf16.msra.mxu0 %v4157_v56 }
 0x248   :  { %2543 = vmatmul.mubr.bf16.gmra.mrb[36].mxu1 %v4907_v9  ;;  %2177 = vmatprep.subr.bf16.mxu0 %v4162_v62 }
 0x249   :  { %2566 = vmatpush1.bf16.msra.mxu1 %v4154_v60  ;;  %2593 = vmatprep.mubr.bf16.mxu1 %v4313_v0 }
 0x24a   :  { %2567 = vmatprep.subr.bf16.mxu1 %v4159_v61 }
 0x24b   :  { %2178 = vmatpush1.bf16.msra.mxu0 %v4160_v38 }
 0x24c   :  { %2179 = vmatprep.subr.bf16.mxu0 %v4165_v20 }
 0x24d   :  { %2568 = vmatpush1.bf16.msra.mxu1 %v4157_v56 }
 0x24e   :  { %2569 = vmatprep.subr.bf16.mxu1 %v4162_v62 }
 0x24f   :  { %2180 = vmatpush1.bf16.msra.mxu0 %v4163_v41 }
 0x250   :  { %2181 = vmatprep.subr.bf16.mxu0 %v4168_v21 }
 0x251   :  { %2570 = vmatpush1.bf16.msra.mxu1 %v4160_v38 }
 0x252   :  { %2571 = vmatprep.subr.bf16.mxu1 %v4165_v20 }
 0x253   :  { %2182 = vmatpush1.bf16.msra.mxu0 %v4166_v63 }
 0x254   :  { %2183 = vmatprep.subr.bf16.mxu0 %v4171_v1 }
 0x255   :  { %2572 = vmatpush1.bf16.msra.mxu1 %v4163_v41  ;;  %v4212_v41 = vld [vmem:[%s5115_s5 + $0xc0] sm:$0xff]  }
 0x256   :  { %2573 = vmatprep.subr.bf16.mxu1 %v4168_v21 }
 0x257   :  { %2184 = vmatpush1.bf16.msra.mxu0 %v4169_v2 }
 0x258   :  { %2329 = vmatprep.subr.bf16.mxu0 %v4174_v44 }
 0x259   :  { %2574 = vmatpush1.bf16.msra.mxu1 %v4166_v63 }
 0x25a   :  { %2202 = vmatmul.mubr.bf16.vlgmr.msra.gmra.mrb[24].mxu0 %v4875_v59  ;;  %2575 = vmatprep.subr.bf16.mxu1 %v4171_v1  ;;  %v4181_v59 = vld [vmem:[#allocation2 + $0x230] ss:$8 sps:$4 sm:$0xff]  }
 0x25b   :  { %2330 = vmatpush1.bf16.msra.mxu0 %v4172_v45  ;;  %2211 = vmatprep.mubr.bf16.mxu0 %v4313_v0 }
 0x25c   :  { %2331 = vmatprep.subr.bf16.mxu0 %v4177_v46 }
 0x25d   :  { %2576 = vmatpush1.bf16.msra.mxu1 %v4169_v2 }
 0x25e   :  { %2624 = vmatprep.subr.bf16.mxu1 %v4174_v44 }
 0x25f   :  { %2332 = vmatpush1.bf16.msra.mxu0 %v4175_v47 }
 0x260   :  { %2594 = vmatmul.mubr.bf16.vlgmr.msra.gmra.mrb[32].mxu1 %v4887_v42  ;;  %2333 = vmatprep.subr.bf16.mxu0 %v4180_v48 }
 0x261   :  { %2625 = vmatpush1.bf16.msra.mxu1 %v4172_v45  ;;  %2603 = vmatprep.mubr.bf16.mxu1 %v4313_v0  ;;  %v4213_v45 = vld [vmem:[%s5115_s5 + $0x80] sm:$0xff]  }
 0x262   :  { %2212 = vmatmul.mubr.bf16.gmra.mrb[28].mxu0 %v4907_v9  ;;  %2626 = vmatprep.subr.bf16.mxu1 %v4177_v46  ;;  %v4198_v9 = vld [vmem:[%s5115_s5 + $0x8] sm:$0xff]  }
 0x263   :  { %2334 = vmatpush1.bf16.msra.mxu0 %v4178_v5  ;;  %2361 = vmatprep.mubr.bf16.mxu0 %v4313_v0 }
 0x264   :  { %2335 = vmatprep.subr.bf16.mxu0 %v4183_v8 }
 0x265   :  { %2627 = vmatpush1.bf16.msra.mxu1 %v4175_v47 }
 0x266   :  { %2628 = vmatprep.subr.bf16.mxu1 %v4180_v48 }
 0x267   :  { %2336 = vmatpush1.bf16.msra.mxu0 %v4181_v59 }
 0x268   :  { %2604 = vmatmul.mubr.bf16.gmra.mrb[36].mxu1 %v4915_v25  ;;  %2337 = vmatprep.subr.bf16.mxu0 %v4186_v24 }
 0x269   :  { %2629 = vmatpush1.bf16.msra.mxu1 %v4178_v5  ;;  %2656 = vmatprep.mubr.bf16.mxu1 %v4313_v0  ;;  %v4214_v5 = vld [vmem:[%s5115_s5 + $0xc8] sm:$0xff]  }
 0x26a   :  { %2630 = vmatprep.subr.bf16.mxu1 %v4183_v8 }
 0x26b   :  { %2338 = vmatpush1.bf16.msra.mxu0 %v4184_v49 }
 0x26c   :  { %2339 = vmatprep.subr.bf16.mxu0 %v4189_v23 }
 0x26d   :  { %2631 = vmatpush1.bf16.msra.mxu1 %v4181_v59  ;;  %v4215_v59 = vld [vmem:[%s5115_s5 + $0x88] sm:$0xff]  }
 0x26e   :  { %2632 = vmatprep.subr.bf16.mxu1 %v4186_v24  ;;  %v4216_v24 = vld [vmem:[%s5115_s5 + $0xd0] sm:$0xff]  }
 0x26f   :  { %2340 = vmatpush1.bf16.msra.mxu0 %v4187_v51 }
 0x270   :  { %2341 = vmatprep.subr.bf16.mxu0 %v4192_v52 }
 0x271   :  { %2633 = vmatpush1.bf16.msra.mxu1 %v4184_v49  ;;  %v4217_v49 = vld [vmem:[%s5115_s5 + $0x90] sm:$0xff]  }
 0x272   :  { %2634 = vmatprep.subr.bf16.mxu1 %v4189_v23  ;;  %v4218_v23 = vld [vmem:[%s5115_s5 + $0xd8] sm:$0xff]  }
 0x273   :  { %2342 = vmatpush1.bf16.msra.mxu0 %v4190_v3 }
 0x274   :  { %2343 = vmatprep.subr.bf16.mxu0 %v4195_v12 }
 0x275   :  { %2635 = vmatpush1.bf16.msra.mxu1 %v4187_v51  ;;  %v4219_v51 = vld [vmem:[%s5115_s5 + $0x98] sm:$0xff]  }
 0x276   :  { %2636 = vmatprep.subr.bf16.mxu1 %v4192_v52  ;;  %v4220_v52 = vld [vmem:[%s5115_s5 + $0xe0] sm:$0xff]  }
 0x277   :  { %2344 = vmatpush1.bf16.msra.mxu0 %v4193_v16 }
 0x278   :  { %3676 = vmatprep.subr.bf16.mxu0 %v4314_v4 }
 0x279   :  { %2637 = vmatpush1.bf16.msra.mxu1 %v4190_v3  ;;  %v4221_v3 = vld [vmem:[%s5115_s5 + $0xa0] sm:$0xff]  }
 0x27a   :  { %2362 = vmatmul.mubr.bf16.vlgmr.msra.gmra.mrb[24].mxu0 %v4887_v42  ;;  %2638 = vmatprep.subr.bf16.mxu1 %v4195_v12  ;;  %v4201_v42 = vld [vmem:[%s5115_s5 + $0x50] sm:$0xff]   ;;  %v4222_v12 = vld [vmem:[%s5115_s5 + $0xe8] sm:$0xff]  }
 0x27b   :  { %2371 = vmatprep.mubr.bf16.mxu0 %v4313_v0  ;;  %3677 = vmatpush3.bf16.msra.mxu0 %v4197_v17  ;;  %v4224_v17 = vld [vmem:[%s5115_s5 + $0xf0] sm:$0xff]  }
 0x27c   :  { %3678 = vmatprep.subr.bf16.mxu0 %v4314_v4 }
 0x27d   :  { %2639 = vmatpush1.bf16.msra.mxu1 %v4193_v16  ;;  %v4223_v16 = vld [vmem:[%s5115_s5 + $0xa8] sm:$0xff]  }
 0x27e   :  { %3696 = vmatprep.subr.bf16.mxu1 %v4314_v4 }
 0x27f   :  { %3679 = vmatpush3.bf16.msra.mxu0 %v4199_v53 }
 0x280   :  { %2657 = vmatmul.mubr.bf16.vlgmr.msra.gmra.mrb[32].mxu1 %v4892_v22  ;;  %3680 = vmatprep.subr.bf16.mxu0 %v4314_v4  ;;  %v4200_v22 = vld [vmem:[%s5115_s5 + $0x10] sm:$0xff]  }
 0x281   :  { %2666 = vmatprep.mubr.bf16.mxu1 %v4313_v0  ;;  %3697 = vmatpush3.bf16.msra.mxu1 %v4196_v7  ;;  %v4202_v0 = vld [vmem:[%s5115_s5 + $0x18] sm:$0xff]   ;;  %v4225_v7 = vld [vmem:[%s5115_s5 + $0xb0] sm:$0xff]  }
 0x282   :  { %2372 = vmatmul.mubr.bf16.gmra.mrb[28].mxu0 %v4915_v25  ;;  %3698 = vmatprep.subr.bf16.mxu1 %v4314_v4  ;;  %v4210_v25 = vld [vmem:[%s5115_s5 + $0x38] sm:$0xff]  }
 0x283   :  { %3681 = vmatpush3.bf16.msra.mxu0 %v4201_v42  ;;  %3692 = vmatprep.mubr.msk.bf16.mxu0 %vm4315_vm2, %v4314_v4 }
 0x284   :  { %3682 = vmatprep.subr.bf16.mxu0 %v4314_v4 }
 0x285   :  { %3699 = vmatpush3.bf16.msra.mxu1 %v4198_v9  ;;  %v4226_v9 = vld [vmem:[%s5115_s5 + $0xf8] sm:$0xff]  }
 0x286   :  { %3700 = vmatprep.subr.bf16.mxu1 %v4314_v4 }
 0x287   :  { %3683 = vmatpush3.bf16.msra.mxu0 %v4203_v10 }
 0x288   :  { %2667 = vmatmul.mubr.bf16.gmra.mrb[36].mxu1 %v4917_v55  ;;  %3684 = vmatprep.subr.bf16.mxu0 %v4314_v4 }
 0x289   :  { %3701 = vmatpush3.bf16.msra.mxu1 %v4200_v22  ;;  %3712 = vmatprep.mubr.msk.bf16.mxu1 %vm4315_vm2, %v4314_v4 }
 0x28a   :  { %3702 = vmatprep.subr.bf16.mxu1 %v4314_v4 }
 0x28b   :  { %3685 = vmatpush3.bf16.msra.mxu0 %v4205_v27 }
 0x28c   :  { %3686 = vmatprep.subr.bf16.mxu0 %v4314_v4 }
 0x28d   :  { %3703 = vmatpush3.bf16.msra.mxu1 %v4202_v0  ;;  %v4227_v0 = vld [vmem:[%s5115_s5 + $0xb8] sm:$0xff]  }
 0x28e   :  { %3704 = vmatprep.subr.bf16.mxu1 %v4314_v4 }
 0x28f   :  { %3687 = vmatpush3.bf16.msra.mxu0 %v4207_v39  ;;  %v4229_v39 = vld [vmem:[#allocation4 + $0x8] sm:$0xff]  }
 0x290   :  { %3688 = vmatprep.subr.bf16.mxu0 %v4314_v4 }
 0x291   :  { %3705 = vmatpush3.bf16.msra.mxu1 %v4204_v11 }
 0x292   :  { %3706 = vmatprep.subr.bf16.mxu1 %v4314_v4 }
 0x293   :  { %3689 = vmatpush3.bf16.msra.mxu0 %v4209_v14  ;;  %v4231_v14 = vld [vmem:[#allocation4 + $0x18] sm:$0xff]  }
 0x294   :  { %3690 = vmatprep.subr.bf16.mxu0 %v4314_v4 }
 0x295   :  { %3707 = vmatpush3.bf16.msra.mxu1 %v4206_v19  ;;  %v4228_v19 = vld [vmem:[#allocation4] sm:$0xff]  }
 0x296   :  { %3708 = vmatprep.subr.bf16.mxu1 %v4314_v4 }
 0x297   :  { %3691 = vmatpush3.bf16.msra.mxu0 %v4211_v26  ;;  %v4233_v26 = vld [vmem:[#allocation4 + $0x28] sm:$0xff]  }
 0x298   :  { %3716 = vmatprep.subr.bf16.mxu0 %v4314_v4 }
 0x299   :  { %3709 = vmatpush3.bf16.msra.mxu1 %v4208_v13  ;;  %v4230_v13 = vld [vmem:[#allocation4 + $0x10] sm:$0xff]  }
 0x29a   :  { %3710 = vmatprep.subr.bf16.mxu1 %v4314_v4 }
 0x29d   :  { %3711 = vmatpush3.bf16.msra.mxu1 %v4210_v25  ;;  %v4232_v25 = vld [vmem:[#allocation4 + $0x20] sm:$0xff]  }
 0x29e   :  { %3736 = vmatprep.subr.bf16.mxu1 %v4314_v4 }
 0x34d   :  { %v2363_v54 = vpop.f32.mrb[24].mxu0 }
 0x34e   :  { %v2365_v55 = vpop.f32.mrb[25].mxu0 }
 0x34f   :  { %v2390_v36 = vmax.f32 %v2363_v54, %v2365_v55  ;;  %v2367_v15 = vpop.f32.mrb[26].mxu0  ;;  %v4234_v54 = vld [vmem:[#allocation4 + $0x30] sm:$0xff]   ;;  %v4235_v55 = vld [vmem:[#allocation4 + $0x38] sm:$0xff]  }
 0x350   :  { %v2369_v40 = vpop.f32.mrb[27].mxu0 }
 0x351   :  { %v2391_v43 = vmax.f32 %v2367_v15, %v2369_v40 }
 0x353   :  { %v2658_v50 = vpop.f32.mrb[32].mxu1 }
 0x354   :  { %v2660_v28 = vpop.f32.mrb[33].mxu1 }
 0x355   :  { %v2685_v18 = vmax.f32 %v2658_v50, %v2660_v28  ;;  %v2373_v6 = vpop.f32.mrb[28].mxu0  ;;  %v2662_v29 = vpop.f32.mrb[34].mxu1 }
 0x356   :  { %v2375_v58 = vpop.f32.mrb[29].mxu0  ;;  %v2664_v30 = vpop.f32.mrb[35].mxu1 }
 0x357   :  { %v2689_v31 = vmax.f32 %v2390_v36, %v2685_v18  ;;  %v2392_v32 = vmax.f32 %v2373_v6, %v2375_v58  ;;  %v2686_v33 = vmax.f32 %v2662_v29, %v2664_v30  ;;  %v2377_v34 = vpop.f32.mrb[30].mxu0 }
 0x358   :  { %v2379_v35 = vpop.f32.mrb[31].mxu0 }
 0x359   :  { %v2700_v37 = vadd.f32 %v5022_v57, %v2689_v31  ;;  %v2690_v60 = vmax.f32 %v2391_v43, %v2686_v33  ;;  %v2393_v61 = vmax.f32 %v2377_v34, %v2379_v35 }
 0x35b   :  { %v2704_v56 = vmax.f32 %v2700_v37, 0.0  ;;  %v2701_v62 = vadd.f32 %v5022_v57, %v2690_v60  ;;  %v2668_v38 = vpop.f32.mrb[36].mxu1 }
 0x35c   :  { %v2670_v20 = vpop.f32.mrb[37].mxu1 }
 0x35d   :  { %v3627_v21 = vpack.c.bf16 %v2704_v56, %v2704_v56  ;;  %v2705_v63 = vmax.f32 %v2701_v62, 0.0  ;;  %v2687_v1 = vmax.f32 %v2668_v38, %v2670_v20  ;;  %v2672_v2 = vpop.f32.mrb[38].mxu1  ;;  %v3582_v38 = vld [vmem:[#allocation6] ss:$0 sm:$0xff] }
 0x35e   :  { %v2674_v44 = vpop.f32.mrb[39].mxu1 }
 0x35f   :  { %v3628_v46 = vpack.c.bf16 %v2705_v63, %v2705_v63  ;;  %v2691_v47 = vmax.f32 %v2392_v32, %v2687_v1  ;;  %v2688_v48 = vmax.f32 %v2672_v2, %v2674_v44  ;;  %3713 = vmatmul.mubr.bf16.vlgmr.msra.gmra.mrb[40].mxu1 %v3627_v21 }
 0x360   :  { %3737 = vmatpush3.bf16.msra.mxu1 %v4212_v41  ;;  %3752 = vmatprep.mubr.msk.bf16.mxu1 %vm4315_vm2, %v4314_v4 }
 0x361   :  { %v2692_v8 = vmax.f32 %v2393_v61, %v2688_v48  ;;  %3693 = vmatmul.mubr.bf16.vlgmr.msra.gmra.mrb[32].mxu0 %v3628_v46  ;;  %3738 = vmatprep.subr.bf16.mxu1 %v4314_v4  ;;  %v2702_v42 = vadd.f32 %v5022_v57, %v2691_v47 }
 0x362   :  { %3717 = vmatpush3.bf16.msra.mxu0 %v4213_v45  ;;  %3732 = vmatprep.mubr.msk.bf16.mxu0 %vm4315_vm2, %v4314_v4 }
 0x363   :  { %3718 = vmatprep.subr.bf16.mxu0 %v4314_v4  ;;  %v2703_v53 = vadd.f32 %v5022_v57, %v2692_v8  ;;  %v2706_v10 = vmax.f32 %v2702_v42, 0.0 }
 0x364   :  { %3739 = vmatpush3.bf16.msra.mxu1 %v4214_v5 }
 0x365   :  { %3740 = vmatprep.subr.bf16.mxu1 %v4314_v4  ;;  %v2707_v22 = vmax.f32 %v2703_v53, 0.0  ;;  %v3629_v27 = vpack.c.bf16 %v2706_v10, %v2706_v10 }
 0x366   :  { %3719 = vmatpush3.bf16.msra.mxu0 %v4215_v59 }
 0x367   :  { %3720 = vmatprep.subr.bf16.mxu0 %v4314_v4  ;;  %v3630_v11 = vpack.c.bf16 %v2707_v22, %v2707_v22 }
 0x368   :  { %3741 = vmatpush3.bf16.msra.mxu1 %v4216_v24 }
 0x369   :  { %3742 = vmatprep.subr.bf16.mxu1 %v4314_v4 }
 0x36a   :  { %3721 = vmatpush3.bf16.msra.mxu0 %v4217_v49 }
 0x36b   :  { %3722 = vmatprep.subr.bf16.mxu0 %v4314_v4 }
 0x36c   :  { %3743 = vmatpush3.bf16.msra.mxu1 %v4218_v23 }
 0x36d   :  { %3744 = vmatprep.subr.bf16.mxu1 %v4314_v4 }
 0x36e   :  { %3723 = vmatpush3.bf16.msra.mxu0 %v4219_v51 }
 0x36f   :  { %3724 = vmatprep.subr.bf16.mxu0 %v4314_v4 }
 0x370   :  { %3745 = vmatpush3.bf16.msra.mxu1 %v4220_v52 }
 0x371   :  { %3746 = vmatprep.subr.bf16.mxu1 %v4314_v4 }
 0x372   :  { %3725 = vmatpush3.bf16.msra.mxu0 %v4221_v3 }
 0x373   :  { %3726 = vmatprep.subr.bf16.mxu0 %v4314_v4 }
 0x374   :  { %3747 = vmatpush3.bf16.msra.mxu1 %v4222_v12 }
 0x375   :  { %3748 = vmatprep.subr.bf16.mxu1 %v4314_v4 }
 0x376   :  { %3727 = vmatpush3.bf16.msra.mxu0 %v4223_v16 }
 0x377   :  { %3728 = vmatprep.subr.bf16.mxu0 %v4314_v4 }
 0x378   :  { %3749 = vmatpush3.bf16.msra.mxu1 %v4224_v17 }
 0x379   :  { %3750 = vmatprep.subr.bf16.mxu1 %v4314_v4 }
 0x37a   :  { %3729 = vmatpush3.bf16.msra.mxu0 %v4225_v7 }
 0x37b   :  { %3730 = vmatprep.subr.bf16.mxu0 %v4314_v4 }
 0x37c   :  { %3751 = vmatpush3.bf16.msra.mxu1 %v4226_v9 }
 0x37e   :  { %3731 = vmatpush3.bf16.msra.mxu0 %v4227_v0 }
 0x37f   :  { %3753 = vmatmul.mubr.bf16.vlgmr.msra.gmra.mrb[44].mxu1 %v3630_v11  ;;  %3756 = vmatprep.subr.bf16.mxu0 %v4314_v4 }
 0x381   :  { %3733 = vmatmul.mubr.bf16.vlgmr.msra.gmra.mrb[36].mxu0 %v3629_v27 }
 0x382   :  { %3772 = vmatprep.mubr.msk.bf16.mxu0 %vm4315_vm2, %v4314_v4  ;;  %3757 = vmatpush3.bf16.msra.mxu0 %v4228_v19 }
 0x383   :  { %3758 = vmatprep.subr.bf16.mxu0 %v4314_v4 }
 0x386   :  { %3759 = vmatpush3.bf16.msra.mxu0 %v4229_v39 }
 0x387   :  { %3760 = vmatprep.subr.bf16.mxu0 %v4314_v4 }
 0x38a   :  { %3761 = vmatpush3.bf16.msra.mxu0 %v4230_v13 }
 0x38b   :  { %3762 = vmatprep.subr.bf16.mxu0 %v4314_v4 }
 0x38e   :  { %3763 = vmatpush3.bf16.msra.mxu0 %v4231_v14 }
 0x38f   :  { %3764 = vmatprep.subr.bf16.mxu0 %v4314_v4 }
 0x392   :  { %3765 = vmatpush3.bf16.msra.mxu0 %v4232_v25 }
 0x393   :  { %3766 = vmatprep.subr.bf16.mxu0 %v4314_v4 }
 0x396   :  { %3767 = vmatpush3.bf16.msra.mxu0 %v4233_v26 }
 0x397   :  { %3768 = vmatprep.subr.bf16.mxu0 %v4314_v4 }
 0x39a   :  { %3769 = vmatpush3.bf16.msra.mxu0 %v4234_v54 }
 0x39b   :  { %3770 = vmatprep.subr.bf16.mxu0 %v4314_v4  ;;  %v3581_v4 = vld [vmem:[%s5116_s6] ss:$0 sm:$0xff] }
 0x39e   :  { %3771 = vmatpush3.bf16.msra.mxu0 %v4235_v55 }
 0x432   :  { %v2927_v36 = vpop.f32.mrb[40].mxu1 }
 0x433   :  { %v3714_v15 = vpop.f32.mrb[41].mxu1 }
 0x434   :  { %v2839_v40 = vpop.f32.mrb[32].mxu0  ;;  %v2930_v43 = vpop.f32.mrb[42].mxu1 }
 0x435   :  { %v2928_v50 = vadd.f32 %v2927_v36, %v2839_v40  ;;  %v3694_v28 = vpop.f32.mrb[33].mxu0  ;;  %v3715_v18 = vpop.f32.mrb[43].mxu1 }
 0x436   :  { %v2842_v6 = vpop.f32.mrb[34].mxu0 }
 0x437   :  { %v3695_v29 = vpop.f32.mrb[35].mxu0 }
 0x452   :  { %v3138_v57 = vpop.f32.mrb[44].mxu1 }
 0x453   :  { %v3754_v58 = vpop.f32.mrb[45].mxu1 }
 0x454   :  { %v3032_v30 = vpop.f32.mrb[36].mxu0  ;;  %v3141_v31 = vpop.f32.mrb[46].mxu1 }
 0x455   :  { %v3038_v32 = vadd.f32 %v3032_v30, %v2928_v50  ;;  %v3734_v33 = vpop.f32.mrb[37].mxu0  ;;  %v3755_v34 = vpop.f32.mrb[47].mxu1 }
 0x456   :  { %v3035_v35 = vpop.f32.mrb[38].mxu0 }
 0x457   :  { %v3144_v37 = vadd.f32 %v3138_v57, %v3038_v32  ;;  %v3735_v60 = vpop.f32.mrb[39].mxu0 }
 0x459   :  { %v3152_v61 = vadd.f32 %v3581_v4, %v3144_v37 }
 0x45b   :  { %v3153_v56 = vmax.f32 %v3152_v61, 0.0 }
 0x45d   :  { %v3154_v62 = vpack.c.bf16 %v3153_v56, %v3153_v56 }
 0x45f   :  { %3773 = vmatmul.mubr.bf16.vlgmr.msra.gmra.mrb[40].mxu0 %v3154_v62 }
 0x532   :  { %v3260_v20 = vpop.f32.mrb[40].mxu0 }
 0x533   :  { %v3261_v41 = vadd.f32 %v3582_v38, %v3260_v20  ;;  %v3774_v21 = vpop.f32.mrb[41].mxu0 }
 0x534   :  { %v3263_v63 = vpop.f32.mrb[42].mxu0 }
 0x535   :  { %3266 = vst [vmem:[%s5119_s9] sm:$0xff] %v3261_v41  ;;  %v3775_v1 = vpop.f32.mrb[43].mxu0 }
 0x536   :  { %3271 = vsyncpa [#allocation3], 1 }
 0x537   :  { %3272 = vsyncpa [#allocation5], 1 }

</bundles_post_ra>
